<compile_context>
chip_gen: v7x
topology: tpu7x:2x2x1
jax: 0.10.0
libtpu: 0.0.40
codegen_flags: <defaults>
</compile_context>

<pallas_src>
import math

import jax
import jax.numpy as jnp
from jax import lax
from jax.experimental import pallas as pl
from jax.experimental.pallas import tpu as pltpu

# ----------------------------- model dims -----------------------------------
B = 2          # batch
L = 8          # context length (seq)
D = 32         # transformer width
H = 4          # attention heads
HD = D // H    # head dim
N_LAYERS = 2
VOCAB = 64
D_PROJ = 32    # text_projection output dim
N_TOK = B * L  # flattened token count

_EPS = 1e-5
_NEG = -1e30   # additive mask value (softmax-equivalent to -inf)


def _layernorm(x, gamma, beta):
    mean = jnp.mean(x, axis=-1, keepdims=True)
    var = jnp.mean((x - mean) ** 2, axis=-1, keepdims=True)
    return (x - mean) * lax.rsqrt(var + _EPS) * gamma + beta


# ---------------------- fused transformer + head kernel ----------------------
def fused_encoder_kernel(eot_ref,                        # scalar prefetch (SMEM), flat row ids
                         x0_ref, mask_ref,               # constant-index inputs
                         vec_ref,                        # (1, 9, D) packed per-layer vectors
                         wqkv_ref, wout_ref, wfc_ref, bfc_ref, wproj_ref,
                         lnf_ref, tproj_ref,
                         o_ref,                          # (B, D_PROJ)
                         x_scr):                         # VMEM (N_TOK, D), layer-resident
    layer = pl.program_id(0)

    @pl.when(layer == 0)
    def _():
        x_scr[...] = x0_ref[...]

    x = x_scr[...]                                       # (N_TOK, D) f32
    mask = mask_ref[...]                                 # (N_TOK, N_TOK) additive
    vec = vec_ref[0]                                     # (9, D) packed vectors
    # rows: 0 ln1_g, 1 ln1_b, 2 bq(scaled), 3 bk, 4 bv, 5 bout, 6 ln2_g, 7 ln2_b, 8 bproj

    # ---- attention branch: x = x + attn(ln_1(x)) ----
    xn = _layernorm(x, vec[0:1, :], vec[1:2, :])
    qkv = jnp.dot(xn, wqkv_ref[0],
                  preferred_element_type=jnp.float32)    # (N_TOK, 3D)
    q = qkv[:, 0 * D:1 * D] + vec[2:3, :]   # Q path pre-scaled by 1/sqrt(HD)
    k = qkv[:, 1 * D:2 * D] + vec[3:4, :]
    v = qkv[:, 2 * D:3 * D] + vec[4:5, :]
    w_o = wout_ref[0]                        # (D, D)

    attn = jnp.zeros((N_TOK, D), jnp.float32)
    for h in range(H):           # static unroll; heads fold into the out-proj (no concat)
        sl = slice(h * HD, (h + 1) * HD)
        s = jnp.einsum('nd,md->nm', q[:, sl], k[:, sl],
                       preferred_element_type=jnp.float32) + mask
        s = s - jnp.max(s, axis=-1, keepdims=True)
        p = jnp.exp(s)
        p = p * pl.reciprocal(jnp.sum(p, axis=-1, keepdims=True), approx=True)
        ctx_h = jnp.dot(p, v[:, sl], preferred_element_type=jnp.float32)     # (N_TOK, HD)
        attn = attn + jnp.dot(ctx_h, w_o[sl, :],
                              preferred_element_type=jnp.float32)            # (N_TOK, D)
    x = x + attn + vec[5:6, :]

    # ---- MLP branch: x = x + mlp(ln_2(x)) ----
    xn2 = _layernorm(x, vec[6:7, :], vec[7:8, :])
    hmid = jnp.dot(xn2, wfc_ref[0],
                   preferred_element_type=jnp.float32) + bfc_ref[0]
    hmid = hmid * jax.nn.sigmoid(1.702 * hmid)           # CLIP QuickGELU
    mlp = jnp.dot(hmid, wproj_ref[0],
                  preferred_element_type=jnp.float32) + vec[8:9, :]
    x = x + mlp
    x_scr[...] = x

    # ---- final head folded into the last grid step ----
    @pl.when(layer == N_LAYERS - 1)
    def _():
        # eot_ref[b] is a flat row index b*L + argmax(text[b]); guaranteed < N_TOK.
        rows = [x_scr[pl.ds(eot_ref[b], 1), :] for b in range(B)]   # B x (1, D)
        g = jnp.concatenate(rows, axis=0)                            # (B, D)
        # LayerNorm is per-token, so gather-then-LN == LN-then-gather.
        lnf = lnf_ref[...]                                           # (2, D)
        gn = _layernorm(g, lnf[0:1, :], lnf[1:2, :])
        # TODO(synk): the module casts ln_final output to float16 before the
        # projection; Mosaic has no reliable fp16 compute path, so the head
        # stays in float32 here.
        o_ref[...] = jnp.dot(gn, tproj_ref[...],
                             preferred_element_type=jnp.float32)


# --------------------------- weight preparation -------------------------------
def prepare_weights(params):
    """Stack per-layer weights with a leading layer dim, pack the width-D
    vectors into one tensor per layer, and pre-scale the Q path by 1/sqrt(HD)."""
    scale = 1.0 / math.sqrt(HD)
    col_scale = jnp.concatenate([jnp.full((D,), scale, jnp.float32),
                                 jnp.ones((2 * D,), jnp.float32)])
    layers = params['layers']

    def stack(fn):
        return jnp.stack([fn(lp) for lp in layers], axis=0)

    def pack_vecs(lp):
        bq = lp['bqkv'][0 * D:1 * D] * scale
        bk = lp['bqkv'][1 * D:2 * D]
        bv = lp['bqkv'][2 * D:3 * D]
        return jnp.stack([lp['ln1_g'], lp['ln1_b'], bq, bk, bv,
                          lp['bout'], lp['ln2_g'], lp['ln2_b'], lp['bproj']],
                         axis=0)                                    # (9, D)

    stacked = (
        stack(pack_vecs),                                           # (NL, 9, D)
        stack(lambda lp: lp['wqkv'].T * col_scale[None, :]),        # (NL, D, 3D)
        stack(lambda lp: lp['wout'].T),                             # (NL, D, D)
        stack(lambda lp: lp['wfc'].T),                              # (NL, D, 4D)
        stack(lambda lp: lp['bfc'].reshape(1, 4 * D)),              # (NL, 1, 4D)
        stack(lambda lp: lp['wproj'].T),                            # (NL, 4D, D)
    )
    lnf = jnp.stack([params['ln_final_g'], params['ln_final_b']], axis=0)   # (2, D)
    return stacked, lnf, params['text_projection']


def _causal_batch_mask():
    """Additive mask over flat (B*L) tokens: causal within a batch row, -inf across rows."""
    rows = jnp.arange(N_TOK)
    b_idx = rows // L
    t_idx = rows % L
    ok = (b_idx[:, None] == b_idx[None, :]) & (t_idx[None, :] <= t_idx[:, None])
    return jnp.where(ok, 0.0, _NEG).astype(jnp.float32)


def _cost_estimate():
    mm = lambda m, k, n: 2 * m * k * n
    per_layer = (mm(N_TOK, D, 3 * D)
                 + H * (mm(N_TOK, HD, N_TOK) + mm(N_TOK, N_TOK, HD) + mm(N_TOK, HD, D))
                 + mm(N_TOK, D, 4 * D) + mm(N_TOK, 4 * D, D))
    flops = N_LAYERS * per_layer + mm(B, D, D_PROJ)
    transcendentals = N_LAYERS * (H * N_TOK * N_TOK + N_TOK * 4 * D + 6 * N_TOK) + 2 * B
    weight_bytes = 4 * N_LAYERS * (9 * D + D * 3 * D + D * D + D * 4 * D + 4 * D + 4 * D * D)
    bytes_accessed = (weight_bytes
                      + 4 * (N_TOK * D + N_TOK * N_TOK + 2 * D + D * D_PROJ + B * D_PROJ)
                      + 4 * B)
    return pl.CostEstimate(flops=flops, transcendentals=transcendentals,
                           bytes_accessed=bytes_accessed)


# ------------------------------ parameters ------------------------------------
def make_params(key):
    keys = jax.random.split(key, 3 + N_LAYERS)
    params = {
        'token_embedding': jax.random.normal(keys[0], (VOCAB, D), jnp.float32) * 0.02,
        'positional_embedding': jax.random.normal(keys[1], (L, D), jnp.float32) * 0.01,
        'ln_final_g': jnp.ones((D,), jnp.float32),
        'ln_final_b': jnp.zeros((D,), jnp.float32),
        'text_projection': jax.random.normal(keys[2], (D, D_PROJ), jnp.float32) * (D ** -0.5),
        'layers': [],
    }
    for i in range(N_LAYERS):
        k = jax.random.split(keys[3 + i], 4)
        params['layers'].append(dict(
            ln1_g=jnp.ones((D,), jnp.float32), ln1_b=jnp.zeros((D,), jnp.float32),
            wqkv=jax.random.normal(k[0], (3 * D, D), jnp.float32) * 0.05,
            bqkv=jnp.zeros((3 * D,), jnp.float32),
            wout=jax.random.normal(k[1], (D, D), jnp.float32) * 0.05,
            bout=jnp.zeros((D,), jnp.float32),
            ln2_g=jnp.ones((D,), jnp.float32), ln2_b=jnp.zeros((D,), jnp.float32),
            wfc=jax.random.normal(k[2], (4 * D, D), jnp.float32) * 0.05,
            bfc=jnp.zeros((4 * D,), jnp.float32),
            wproj=jax.random.normal(k[3], (D, 4 * D), jnp.float32) * 0.05,
            bproj=jnp.zeros((D,), jnp.float32),
        ))
    return params


# -------------------------------- forward ------------------------------------
def mtext_encoder_forward(text, params):
    stacked, lnf, tproj = prepare_weights(params)

    # token_embedding(text).type(fp16) + positional_embedding.type(fp16)  (glue)
    x = jnp.take(params['token_embedding'], text, axis=0)                 # (B, L, D)
    x = x.astype(jnp.float16) + params['positional_embedding'].astype(jnp.float16)
    # TODO(synk): Mosaic has no reliable float16 compute path; the fp16 cast above
    # reproduces the module's .type(torch.float16) rounding at the embedding add,
    # then the fused kernel computes in float32.
    x = x.astype(jnp.float32).reshape(N_TOK, D)                           # flat layout

    # flat row index of the eot token for each batch element
    eot_rows = (jnp.arange(B, dtype=jnp.int32) * L
                + jnp.argmax(text, axis=-1).astype(jnp.int32))            # (B,)

    per_layer = lambda blk: pl.BlockSpec(blk, lambda l, eot: (l, 0, 0))
    const2 = lambda blk: pl.BlockSpec(blk, lambda l, eot: (0, 0))

    grid_spec = pltpu.PrefetchScalarGridSpec(
        num_scalar_prefetch=1,
        grid=(N_LAYERS,),
        in_specs=[
            const2((N_TOK, D)),            # x0 (loaded once; constant block index)
            const2((N_TOK, N_TOK)),        # hoisted causal + batch-block mask
            per_layer((1, 9, D)),          # packed per-layer vectors
            per_layer((1, D, 3 * D)),      # wqkv (Q columns pre-scaled)
            per_layer((1, D, D)),          # wout
            per_layer((1, D, 4 * D)),      # wfc
            per_layer((1, 1, 4 * D)),      # bfc
            per_layer((1, 4 * D, D)),      # wproj
            const2((2, D)),                # ln_final gamma/beta
            const2((D, D_PROJ)),           # text_projection
        ],
        out_specs=pl.BlockSpec((B, D_PROJ), lambda l, eot: (0, 0)),
        scratch_shapes=[pltpu.VMEM((N_TOK, D), jnp.float32)],
    )

    out = pl.pallas_call(
        fused_encoder_kernel,
        out_shape=jax.ShapeDtypeStruct((B, D_PROJ), jnp.float32),
        grid_spec=grid_spec,
        compiler_params=pltpu.CompilerParams(
            dimension_semantics=("arbitrary",)),
        cost_estimate=_cost_estimate(),
    )(eot_rows, x, _causal_batch_mask(), *stacked, lnf, tproj)

    return out.astype(jnp.float32)                                         # .float()


# --------------------------------- main ---------------------------------------
if __name__ == "__main__":
    root = jax.random.PRNGKey(0)
    k_text, k_params = jax.random.split(root)

    text = jax.random.randint(k_text, (B, L), 1, VOCAB, dtype=jnp.int32)
    params = make_params(k_params)

    out = mtext_encoder_forward(text, params)
    out = jax.block_until_ready(out)
    assert out.shape == (B, D_PROJ) and out.dtype == jnp.float32
    print("KERNEL_OK")
</pallas_src>

<mosaic_0001>
module attributes {stable_mosaic.version = 11 : i64} {
  func.func @fused_encoder_kernel(%arg0: i32, %arg1: memref<2xi32, #tpu.memory_space<smem>>, %arg2: memref<16x32xf32, #tpu.memory_space<vmem>>, %arg3: memref<16x16xf32, #tpu.memory_space<vmem>>, %arg4: memref<1x9x32xf32, #tpu.memory_space<vmem>>, %arg5: memref<1x32x96xf32, #tpu.memory_space<vmem>>, %arg6: memref<1x32x32xf32, #tpu.memory_space<vmem>>, %arg7: memref<1x32x128xf32, #tpu.memory_space<vmem>>, %arg8: memref<1x1x128xf32, #tpu.memory_space<vmem>>, %arg9: memref<1x128x32xf32, #tpu.memory_space<vmem>>, %arg10: memref<2x32xf32, #tpu.memory_space<vmem>>, %arg11: memref<32x32xf32, #tpu.memory_space<vmem>>, %arg12: memref<2x32xf32, #tpu.memory_space<vmem>>, %arg13: memref<16x32xf32, #tpu.memory_space<vmem>>) attributes {dimension_semantics = [#tpu.dimension_semantics<arbitrary>], iteration_bounds = array<i64: 2>, scalar_prefetch = 1 : i64, scratch_operands = 1 : i64, tpu.core_type = #tpu.core_type<tc>, window_params = [{pipeline_mode = #tpu.pipeline_mode<synchronous>, transform_indices = @transform_0, window_bounds = array<i64: 16, 32>}, {pipeline_mode = #tpu.pipeline_mode<synchronous>, transform_indices = @transform_1, window_bounds = array<i64: 16, 16>}, {transform_indices = @transform_2, window_bounds = array<i64: 1, 9, 32>}, {transform_indices = @transform_3, window_bounds = array<i64: 1, 32, 96>}, {transform_indices = @transform_4, window_bounds = array<i64: 1, 32, 32>}, {transform_indices = @transform_5, window_bounds = array<i64: 1, 32, 128>}, {transform_indices = @transform_6, window_bounds = array<i64: 1, 1, 128>}, {transform_indices = @transform_7, window_bounds = array<i64: 1, 128, 32>}, {pipeline_mode = #tpu.pipeline_mode<synchronous>, transform_indices = @transform_8, window_bounds = array<i64: 2, 32>}, {pipeline_mode = #tpu.pipeline_mode<synchronous>, transform_indices = @transform_9, window_bounds = array<i64: 32, 32>}, {pipeline_mode = #tpu.pipeline_mode<synchronous>, transform_indices = @transform_10, window_bounds = array<i64: 2, 32>}]} {
    %c0_i32 = arith.constant 0 : i32
    %0 = arith.cmpi eq, %arg0, %c0_i32 : i32
    %1 = arith.extui %0 : i1 to i32
    %c0_i32_0 = arith.constant 0 : i32
    %2 = arith.cmpi ne, %1, %c0_i32_0 : i32
    scf.if %2 {
      %c0_60 = arith.constant 0 : index
      %c0_61 = arith.constant 0 : index
      %179 = vector.load %arg2[%c0_60, %c0_61] : memref<16x32xf32, #tpu.memory_space<vmem>>, vector<16x32xf32>
      %c0_62 = arith.constant 0 : index
      %c0_63 = arith.constant 0 : index
      %180 = vector.load %arg13[%c0_62, %c0_63] : memref<16x32xf32, #tpu.memory_space<vmem>>, vector<16x32xf32>
      tpu.vector_store %arg13[%c0_62, %c0_63], %179 {strides = array<i32>} : memref<16x32xf32, #tpu.memory_space<vmem>>, vector<16x32xf32>,
    } else {
    }
    %c0 = arith.constant 0 : index
    %c0_1 = arith.constant 0 : index
    %3 = vector.load %arg13[%c0, %c0_1] : memref<16x32xf32, #tpu.memory_space<vmem>>, vector<16x32xf32>
    %c0_2 = arith.constant 0 : index
    %c0_3 = arith.constant 0 : index
    %4 = vector.load %arg3[%c0_2, %c0_3] : memref<16x16xf32, #tpu.memory_space<vmem>>, vector<16x16xf32>
    %c0_4 = arith.constant 0 : index
    %c0_5 = arith.constant 0 : index
    %c0_6 = arith.constant 0 : index
    %5 = vector.load %arg4[%c0_4, %c0_5, %c0_6] : memref<1x9x32xf32, #tpu.memory_space<vmem>>, vector<1x9x32xf32>
    %6 = vector.shape_cast %5 : vector<1x9x32xf32> to vector<9x32xf32>
    %7 = vector.extract_strided_slice %6 {offsets = [0, 0], sizes = [1, 32], strides = [1, 1]} : vector<9x32xf32> to vector<1x32xf32>
    %8 = vector.extract_strided_slice %6 {offsets = [1, 0], sizes = [1, 32], strides = [1, 1]} : vector<9x32xf32> to vector<1x32xf32>
    %cst = arith.constant dense<0.000000e+00> : vector<16xf32>
    %9 = vector.multi_reduction <add>, %3, %cst [1] : vector<16x32xf32> to vector<16xf32>
    %10 = vector.shape_cast %9 : vector<16xf32> to vector<16x1xf32>
    %cst_7 = arith.constant 3.200000e+01 : f32
    %11 = vector.broadcast %cst_7 : f32 to vector<16x1xf32>
    %12 = arith.divf %10, %11 : vector<16x1xf32>
    %13 = vector.broadcast %12 : vector<16x1xf32> to vector<16x32xf32>
    %14 = arith.subf %3, %13 : vector<16x32xf32>
    %15 = arith.mulf %14, %14 : vector<16x32xf32>
    %cst_8 = arith.constant dense<0.000000e+00> : vector<16xf32>
    %16 = vector.multi_reduction <add>, %15, %cst_8 [1] : vector<16x32xf32> to vector<16xf32>
    %17 = vector.shape_cast %16 : vector<16xf32> to vector<16x1xf32>
    %cst_9 = arith.constant 3.200000e+01 : f32
    %18 = vector.broadcast %cst_9 : f32 to vector<16x1xf32>
    %19 = arith.divf %17, %18 : vector<16x1xf32>
    %20 = vector.broadcast %12 : vector<16x1xf32> to vector<16x32xf32>
    %21 = arith.subf %3, %20 : vector<16x32xf32>
    %cst_10 = arith.constant 9.99999974E-6 : f32
    %22 = vector.broadcast %cst_10 : f32 to vector<16x1xf32>
    %23 = arith.addf %19, %22 : vector<16x1xf32>
    %24 = math.rsqrt %23 : vector<16x1xf32>
    %25 = vector.broadcast %24 : vector<16x1xf32> to vector<16x32xf32>
    %26 = arith.mulf %21, %25 : vector<16x32xf32>
    %27 = vector.broadcast %7 : vector<1x32xf32> to vector<16x32xf32>
    %28 = arith.mulf %26, %27 : vector<16x32xf32>
    %29 = vector.broadcast %8 : vector<1x32xf32> to vector<16x32xf32>
    %30 = arith.addf %28, %29 : vector<16x32xf32>
    %c0_11 = arith.constant 0 : index
    %c0_12 = arith.constant 0 : index
    %c0_13 = arith.constant 0 : index
    %31 = vector.load %arg5[%c0_11, %c0_12, %c0_13] : memref<1x32x96xf32, #tpu.memory_space<vmem>>, vector<1x32x96xf32>
    %32 = vector.shape_cast %31 : vector<1x32x96xf32> to vector<32x96xf32>
    %cst_14 = arith.constant dense<0.000000e+00> : vector<16x96xf32>
    %33 = tpu.matmul %30, %32, %cst_14 {dimension_numbers = #tpu.dot_dimension_numbers<[1], [0], [0], [1], [0, 0, 1, 1], [], []>} : vector<16x32xf32>, vector<32x96xf32>, vector<16x96xf32> -> vector<16x96xf32>
    %34 = vector.extract_strided_slice %33 {offsets = [0, 0], sizes = [16, 32], strides = [1, 1]} : vector<16x96xf32> to vector<16x32xf32>
    %35 = vector.extract_strided_slice %6 {offsets = [2, 0], sizes = [1, 32], strides = [1, 1]} : vector<9x32xf32> to vector<1x32xf32>
    %36 = vector.broadcast %35 : vector<1x32xf32> to vector<16x32xf32>
    %37 = arith.addf %34, %36 : vector<16x32xf32>
    %38 = vector.extract_strided_slice %33 {offsets = [0, 32], sizes = [16, 32], strides = [1, 1]} : vector<16x96xf32> to vector<16x32xf32>
    %39 = vector.extract_strided_slice %6 {offsets = [3, 0], sizes = [1, 32], strides = [1, 1]} : vector<9x32xf32> to vector<1x32xf32>
    %40 = vector.broadcast %39 : vector<1x32xf32> to vector<16x32xf32>
    %41 = arith.addf %38, %40 : vector<16x32xf32>
    %42 = vector.extract_strided_slice %33 {offsets = [0, 64], sizes = [16, 32], strides = [1, 1]} : vector<16x96xf32> to vector<16x32xf32>
    %43 = vector.extract_strided_slice %6 {offsets = [4, 0], sizes = [1, 32], strides = [1, 1]} : vector<9x32xf32> to vector<1x32xf32>
    %44 = vector.broadcast %43 : vector<1x32xf32> to vector<16x32xf32>
    %45 = arith.addf %42, %44 : vector<16x32xf32>
    %c0_15 = arith.constant 0 : index
    %c0_16 = arith.constant 0 : index
    %c0_17 = arith.constant 0 : index
    %46 = vector.load %arg6[%c0_15, %c0_16, %c0_17] : memref<1x32x32xf32, #tpu.memory_space<vmem>>, vector<1x32x32xf32>
    %47 = vector.shape_cast %46 : vector<1x32x32xf32> to vector<32x32xf32>
    %cst_18 = arith.constant 0.000000e+00 : f32
    %48 = vector.broadcast %cst_18 : f32 to vector<16x32xf32>
    %49 = vector.extract_strided_slice %37 {offsets = [0, 0], sizes = [16, 8], strides = [1, 1]} : vector<16x32xf32> to vector<16x8xf32>
    %50 = vector.extract_strided_slice %41 {offsets = [0, 0], sizes = [16, 8], strides = [1, 1]} : vector<16x32xf32> to vector<16x8xf32>
    "tpu.trace_start"() <{level = 10 : i32, message = "nd,md->nm"}> : () -> ()
    %cst_19 = arith.constant dense<0.000000e+00> : vector<16x16xf32>
    %51 = tpu.matmul %49, %50, %cst_19 {dimension_numbers = #tpu.dot_dimension_numbers<[1], [1], [0], [0], [0, 0, 1, 0], [], []>} : vector<16x8xf32>, vector<16x8xf32>, vector<16x16xf32> -> vector<16x16xf32>
    "tpu.trace_stop"() : () -> ()
    %52 = arith.addf %51, %4 : vector<16x16xf32>
    %cst_20 = arith.constant dense<0xFF800000> : vector<16xf32>
    %53 = vector.multi_reduction <maximumf>, %52, %cst_20 [1] : vector<16x16xf32> to vector<16xf32>
    %54 = vector.shape_cast %53 : vector<16xf32> to vector<16x1xf32>
    %55 = vector.broadcast %54 : vector<16x1xf32> to vector<16x16xf32>
    %56 = arith.subf %52, %55 : vector<16x16xf32>
    %57 = math.exp %56 : vector<16x16xf32>
    %cst_21 = arith.constant dense<0.000000e+00> : vector<16xf32>
    %58 = vector.multi_reduction <add>, %57, %cst_21 [1] : vector<16x16xf32> to vector<16xf32>
    %59 = vector.shape_cast %58 : vector<16xf32> to vector<16x1xf32>
    %60 = tpu.reciprocal %59 {approx = true} : vector<16x1xf32> -> vector<16x1xf32>
    %61 = vector.broadcast %60 : vector<16x1xf32> to vector<16x16xf32>
    %62 = arith.mulf %57, %61 : vector<16x16xf32>
    %63 = vector.extract_strided_slice %45 {offsets = [0, 0], sizes = [16, 8], strides = [1, 1]} : vector<16x32xf32> to vector<16x8xf32>
    %cst_22 = arith.constant dense<0.000000e+00> : vector<16x8xf32>
    %64 = tpu.matmul %62, %63, %cst_22 {dimension_numbers = #tpu.dot_dimension_numbers<[1], [0], [0], [1], [0, 0, 1, 1], [], []>} : vector<16x16xf32>, vector<16x8xf32>, vector<16x8xf32> -> vector<16x8xf32>
    %65 = vector.extract_strided_slice %47 {offsets = [0, 0], sizes = [8, 32], strides = [1, 1]} : vector<32x32xf32> to vector<8x32xf32>
    %cst_23 = arith.constant dense<0.000000e+00> : vector<16x32xf32>
    %66 = tpu.matmul %64, %65, %cst_23 {dimension_numbers = #tpu.dot_dimension_numbers<[1], [0], [0], [1], [0, 0, 1, 1], [], []>} : vector<16x8xf32>, vector<8x32xf32>, vector<16x32xf32> -> vector<16x32xf32>
    %67 = arith.addf %48, %66 : vector<16x32xf32>
    %68 = vector.extract_strided_slice %37 {offsets = [0, 8], sizes = [16, 8], strides = [1, 1]} : vector<16x32xf32> to vector<16x8xf32>
    %69 = vector.extract_strided_slice %41 {offsets = [0, 8], sizes = [16, 8], strides = [1, 1]} : vector<16x32xf32> to vector<16x8xf32>
    "tpu.trace_start"() <{level = 10 : i32, message = "nd,md->nm"}> : () -> ()
    %cst_24 = arith.constant dense<0.000000e+00> : vector<16x16xf32>
    %70 = tpu.matmul %68, %69, %cst_24 {dimension_numbers = #tpu.dot_dimension_numbers<[1], [1], [0], [0], [0, 0, 1, 0], [], []>} : vector<16x8xf32>, vector<16x8xf32>, vector<16x16xf32> -> vector<16x16xf32>
    "tpu.trace_stop"() : () -> ()
    %71 = arith.addf %70, %4 : vector<16x16xf32>
    %cst_25 = arith.constant dense<0xFF800000> : vector<16xf32>
    %72 = vector.multi_reduction <maximumf>, %71, %cst_25 [1] : vector<16x16xf32> to vector<16xf32>
    %73 = vector.shape_cast %72 : vector<16xf32> to vector<16x1xf32>
    %74 = vector.broadcast %73 : vector<16x1xf32> to vector<16x16xf32>
    %75 = arith.subf %71, %74 : vector<16x16xf32>
    %76 = math.exp %75 : vector<16x16xf32>
    %cst_26 = arith.constant dense<0.000000e+00> : vector<16xf32>
    %77 = vector.multi_reduction <add>, %76, %cst_26 [1] : vector<16x16xf32> to vector<16xf32>
    %78 = vector.shape_cast %77 : vector<16xf32> to vector<16x1xf32>
    %79 = tpu.reciprocal %78 {approx = true} : vector<16x1xf32> -> vector<16x1xf32>
    %80 = vector.broadcast %79 : vector<16x1xf32> to vector<16x16xf32>
    %81 = arith.mulf %76, %80 : vector<16x16xf32>
    %82 = vector.extract_strided_slice %45 {offsets = [0, 8], sizes = [16, 8], strides = [1, 1]} : vector<16x32xf32> to vector<16x8xf32>
    %cst_27 = arith.constant dense<0.000000e+00> : vector<16x8xf32>
    %83 = tpu.matmul %81, %82, %cst_27 {dimension_numbers = #tpu.dot_dimension_numbers<[1], [0], [0], [1], [0, 0, 1, 1], [], []>} : vector<16x16xf32>, vector<16x8xf32>, vector<16x8xf32> -> vector<16x8xf32>
    %84 = vector.extract_strided_slice %47 {offsets = [8, 0], sizes = [8, 32], strides = [1, 1]} : vector<32x32xf32> to vector<8x32xf32>
    %cst_28 = arith.constant dense<0.000000e+00> : vector<16x32xf32>
    %85 = tpu.matmul %83, %84, %cst_28 {dimension_numbers = #tpu.dot_dimension_numbers<[1], [0], [0], [1], [0, 0, 1, 1], [], []>} : vector<16x8xf32>, vector<8x32xf32>, vector<16x32xf32> -> vector<16x32xf32>
    %86 = arith.addf %67, %85 : vector<16x32xf32>
    %87 = vector.extract_strided_slice %37 {offsets = [0, 16], sizes = [16, 8], strides = [1, 1]} : vector<16x32xf32> to vector<16x8xf32>
    %88 = vector.extract_strided_slice %41 {offsets = [0, 16], sizes = [16, 8], strides = [1, 1]} : vector<16x32xf32> to vector<16x8xf32>
    "tpu.trace_start"() <{level = 10 : i32, message = "nd,md->nm"}> : () -> ()
    %cst_29 = arith.constant dense<0.000000e+00> : vector<16x16xf32>
    %89 = tpu.matmul %87, %88, %cst_29 {dimension_numbers = #tpu.dot_dimension_numbers<[1], [1], [0], [0], [0, 0, 1, 0], [], []>} : vector<16x8xf32>, vector<16x8xf32>, vector<16x16xf32> -> vector<16x16xf32>
    "tpu.trace_stop"() : () -> ()
    %90 = arith.addf %89, %4 : vector<16x16xf32>
    %cst_30 = arith.constant dense<0xFF800000> : vector<16xf32>
    %91 = vector.multi_reduction <maximumf>, %90, %cst_30 [1] : vector<16x16xf32> to vector<16xf32>
    %92 = vector.shape_cast %91 : vector<16xf32> to vector<16x1xf32>
    %93 = vector.broadcast %92 : vector<16x1xf32> to vector<16x16xf32>
    %94 = arith.subf %90, %93 : vector<16x16xf32>
    %95 = math.exp %94 : vector<16x16xf32>
    %cst_31 = arith.constant dense<0.000000e+00> : vector<16xf32>
    %96 = vector.multi_reduction <add>, %95, %cst_31 [1] : vector<16x16xf32> to vector<16xf32>
    %97 = vector.shape_cast %96 : vector<16xf32> to vector<16x1xf32>
    %98 = tpu.reciprocal %97 {approx = true} : vector<16x1xf32> -> vector<16x1xf32>
    %99 = vector.broadcast %98 : vector<16x1xf32> to vector<16x16xf32>
    %100 = arith.mulf %95, %99 : vector<16x16xf32>
    %101 = vector.extract_strided_slice %45 {offsets = [0, 16], sizes = [16, 8], strides = [1, 1]} : vector<16x32xf32> to vector<16x8xf32>
    %cst_32 = arith.constant dense<0.000000e+00> : vector<16x8xf32>
    %102 = tpu.matmul %100, %101, %cst_32 {dimension_numbers = #tpu.dot_dimension_numbers<[1], [0], [0], [1], [0, 0, 1, 1], [], []>} : vector<16x16xf32>, vector<16x8xf32>, vector<16x8xf32> -> vector<16x8xf32>
    %103 = vector.extract_strided_slice %47 {offsets = [16, 0], sizes = [8, 32], strides = [1, 1]} : vector<32x32xf32> to vector<8x32xf32>
    %cst_33 = arith.constant dense<0.000000e+00> : vector<16x32xf32>
    %104 = tpu.matmul %102, %103, %cst_33 {dimension_numbers = #tpu.dot_dimension_numbers<[1], [0], [0], [1], [0, 0, 1, 1], [], []>} : vector<16x8xf32>, vector<8x32xf32>, vector<16x32xf32> -> vector<16x32xf32>
    %105 = arith.addf %86, %104 : vector<16x32xf32>
    %106 = vector.extract_strided_slice %37 {offsets = [0, 24], sizes = [16, 8], strides = [1, 1]} : vector<16x32xf32> to vector<16x8xf32>
    %107 = vector.extract_strided_slice %41 {offsets = [0, 24], sizes = [16, 8], strides = [1, 1]} : vector<16x32xf32> to vector<16x8xf32>
    "tpu.trace_start"() <{level = 10 : i32, message = "nd,md->nm"}> : () -> ()
    %cst_34 = arith.constant dense<0.000000e+00> : vector<16x16xf32>
    %108 = tpu.matmul %106, %107, %cst_34 {dimension_numbers = #tpu.dot_dimension_numbers<[1], [1], [0], [0], [0, 0, 1, 0], [], []>} : vector<16x8xf32>, vector<16x8xf32>, vector<16x16xf32> -> vector<16x16xf32>
    "tpu.trace_stop"() : () -> ()
    %109 = arith.addf %108, %4 : vector<16x16xf32>
    %cst_35 = arith.constant dense<0xFF800000> : vector<16xf32>
    %110 = vector.multi_reduction <maximumf>, %109, %cst_35 [1] : vector<16x16xf32> to vector<16xf32>
    %111 = vector.shape_cast %110 : vector<16xf32> to vector<16x1xf32>
    %112 = vector.broadcast %111 : vector<16x1xf32> to vector<16x16xf32>
    %113 = arith.subf %109, %112 : vector<16x16xf32>
    %114 = math.exp %113 : vector<16x16xf32>
    %cst_36 = arith.constant dense<0.000000e+00> : vector<16xf32>
    %115 = vector.multi_reduction <add>, %114, %cst_36 [1] : vector<16x16xf32> to vector<16xf32>
    %116 = vector.shape_cast %115 : vector<16xf32> to vector<16x1xf32>
    %117 = tpu.reciprocal %116 {approx = true} : vector<16x1xf32> -> vector<16x1xf32>
    %118 = vector.broadcast %117 : vector<16x1xf32> to vector<16x16xf32>
    %119 = arith.mulf %114, %118 : vector<16x16xf32>
    %120 = vector.extract_strided_slice %45 {offsets = [0, 24], sizes = [16, 8], strides = [1, 1]} : vector<16x32xf32> to vector<16x8xf32>
    %cst_37 = arith.constant dense<0.000000e+00> : vector<16x8xf32>
    %121 = tpu.matmul %119, %120, %cst_37 {dimension_numbers = #tpu.dot_dimension_numbers<[1], [0], [0], [1], [0, 0, 1, 1], [], []>} : vector<16x16xf32>, vector<16x8xf32>, vector<16x8xf32> -> vector<16x8xf32>
    %122 = vector.extract_strided_slice %47 {offsets = [24, 0], sizes = [8, 32], strides = [1, 1]} : vector<32x32xf32> to vector<8x32xf32>
    %cst_38 = arith.constant dense<0.000000e+00> : vector<16x32xf32>
    %123 = tpu.matmul %121, %122, %cst_38 {dimension_numbers = #tpu.dot_dimension_numbers<[1], [0], [0], [1], [0, 0, 1, 1], [], []>} : vector<16x8xf32>, vector<8x32xf32>, vector<16x32xf32> -> vector<16x32xf32>
    %124 = arith.addf %105, %123 : vector<16x32xf32>
    %125 = arith.addf %3, %124 : vector<16x32xf32>
    %126 = vector.extract_strided_slice %6 {offsets = [5, 0], sizes = [1, 32], strides = [1, 1]} : vector<9x32xf32> to vector<1x32xf32>
    %127 = vector.broadcast %126 : vector<1x32xf32> to vector<16x32xf32>
    %128 = arith.addf %125, %127 : vector<16x32xf32>
    %129 = vector.extract_strided_slice %6 {offsets = [6, 0], sizes = [1, 32], strides = [1, 1]} : vector<9x32xf32> to vector<1x32xf32>
    %130 = vector.extract_strided_slice %6 {offsets = [7, 0], sizes = [1, 32], strides = [1, 1]} : vector<9x32xf32> to vector<1x32xf32>
    %cst_39 = arith.constant dense<0.000000e+00> : vector<16xf32>
    %131 = vector.multi_reduction <add>, %128, %cst_39 [1] : vector<16x32xf32> to vector<16xf32>
    %132 = vector.shape_cast %131 : vector<16xf32> to vector<16x1xf32>
    %cst_40 = arith.constant 3.200000e+01 : f32
    %133 = vector.broadcast %cst_40 : f32 to vector<16x1xf32>
    %134 = arith.divf %132, %133 : vector<16x1xf32>
    %135 = vector.broadcast %134 : vector<16x1xf32> to vector<16x32xf32>
    %136 = arith.subf %128, %135 : vector<16x32xf32>
    %137 = arith.mulf %136, %136 : vector<16x32xf32>
    %cst_41 = arith.constant dense<0.000000e+00> : vector<16xf32>
    %138 = vector.multi_reduction <add>, %137, %cst_41 [1] : vector<16x32xf32> to vector<16xf32>
    %139 = vector.shape_cast %138 : vector<16xf32> to vector<16x1xf32>
    %cst_42 = arith.constant 3.200000e+01 : f32
    %140 = vector.broadcast %cst_42 : f32 to vector<16x1xf32>
    %141 = arith.divf %139, %140 : vector<16x1xf32>
    %142 = vector.broadcast %134 : vector<16x1xf32> to vector<16x32xf32>
    %143 = arith.subf %128, %142 : vector<16x32xf32>
    %cst_43 = arith.constant 9.99999974E-6 : f32
    %144 = vector.broadcast %cst_43 : f32 to vector<16x1xf32>
    %145 = arith.addf %141, %144 : vector<16x1xf32>
    %146 = math.rsqrt %145 : vector<16x1xf32>
    %147 = vector.broadcast %146 : vector<16x1xf32> to vector<16x32xf32>
    %148 = arith.mulf %143, %147 : vector<16x32xf32>
    %149 = vector.broadcast %129 : vector<1x32xf32> to vector<16x32xf32>
    %150 = arith.mulf %148, %149 : vector<16x32xf32>
    %151 = vector.broadcast %130 : vector<1x32xf32> to vector<16x32xf32>
    %152 = arith.addf %150, %151 : vector<16x32xf32>
    %c0_44 = arith.constant 0 : index
    %c0_45 = arith.constant 0 : index
    %c0_46 = arith.constant 0 : index
    %153 = vector.load %arg7[%c0_44, %c0_45, %c0_46] : memref<1x32x128xf32, #tpu.memory_space<vmem>>, vector<1x32x128xf32>
    %154 = vector.shape_cast %153 : vector<1x32x128xf32> to vector<32x128xf32>
    %cst_47 = arith.constant dense<0.000000e+00> : vector<16x128xf32>
    %155 = tpu.matmul %152, %154, %cst_47 {dimension_numbers = #tpu.dot_dimension_numbers<[1], [0], [0], [1], [0, 0, 1, 1], [], []>} : vector<16x32xf32>, vector<32x128xf32>, vector<16x128xf32> -> vector<16x128xf32>
    %c0_48 = arith.constant 0 : index
    %c0_49 = arith.constant 0 : index
    %c0_50 = arith.constant 0 : index
    %156 = vector.load %arg8[%c0_48, %c0_49, %c0_50] : memref<1x1x128xf32, #tpu.memory_space<vmem>>, vector<1x1x128xf32>
    %157 = vector.shape_cast %156 : vector<1x1x128xf32> to vector<1x128xf32>
    %158 = vector.broadcast %157 : vector<1x128xf32> to vector<16x128xf32>
    %159 = arith.addf %155, %158 : vector<16x128xf32>
    %cst_51 = arith.constant 1.702000e+00 : f32
    %160 = vector.broadcast %cst_51 : f32 to vector<16x128xf32>
    %161 = arith.mulf %160, %159 : vector<16x128xf32>
    %162 = arith.negf %161 : vector<16x128xf32>
    %163 = math.exp %162 : vector<16x128xf32>
    %cst_52 = arith.constant 1.000000e+00 : f32
    %164 = vector.broadcast %cst_52 : f32 to vector<16x128xf32>
    %165 = arith.addf %164, %163 : vector<16x128xf32>
    %166 = arith.divf %164, %165 : vector<16x128xf32>
    %167 = arith.mulf %159, %166 : vector<16x128xf32>
    %c0_53 = arith.constant 0 : index
    %c0_54 = arith.constant 0 : index
    %c0_55 = arith.constant 0 : index
    %168 = vector.load %arg9[%c0_53, %c0_54, %c0_55] : memref<1x128x32xf32, #tpu.memory_space<vmem>>, vector<1x128x32xf32>
    %169 = vector.shape_cast %168 : vector<1x128x32xf32> to vector<128x32xf32>
    %cst_56 = arith.constant dense<0.000000e+00> : vector<16x32xf32>
    %170 = tpu.matmul %167, %169, %cst_56 {dimension_numbers = #tpu.dot_dimension_numbers<[1], [0], [0], [1], [0, 0, 1, 1], [], []>} : vector<16x128xf32>, vector<128x32xf32>, vector<16x32xf32> -> vector<16x32xf32>
    %171 = vector.extract_strided_slice %6 {offsets = [8, 0], sizes = [1, 32], strides = [1, 1]} : vector<9x32xf32> to vector<1x32xf32>
    %172 = vector.broadcast %171 : vector<1x32xf32> to vector<16x32xf32>
    %173 = arith.addf %170, %172 : vector<16x32xf32>
    %174 = arith.addf %128, %173 : vector<16x32xf32>
    %c0_57 = arith.constant 0 : index
    %c0_58 = arith.constant 0 : index
    %175 = vector.load %arg13[%c0_57, %c0_58] : memref<16x32xf32, #tpu.memory_space<vmem>>, vector<16x32xf32>
    tpu.vector_store %arg13[%c0_57, %c0_58], %174 {strides = array<i32>} : memref<16x32xf32, #tpu.memory_space<vmem>>, vector<16x32xf32>,
    %c1_i32 = arith.constant 1 : i32
    %176 = arith.cmpi eq, %arg0, %c1_i32 : i32
    %177 = arith.extui %176 : i1 to i32
    %c0_i32_59 = arith.constant 0 : i32
    %178 = arith.cmpi ne, %177, %c0_i32_59 : i32
    scf.if %178 {
      %c0_60 = arith.constant 0 : index
      %179 = memref.load %arg1[%c0_60] : memref<2xi32, #tpu.memory_space<smem>>
      %180 = arith.index_cast %179 : i32 to index
      %c0_61 = arith.constant 0 : index
      %181 = vector.load %arg13[%180, %c0_61] : memref<16x32xf32, #tpu.memory_space<vmem>>, vector<1x32xf32>
      %c1 = arith.constant 1 : index
      %182 = memref.load %arg1[%c1] : memref<2xi32, #tpu.memory_space<smem>>
      %183 = arith.index_cast %182 : i32 to index
      %c0_62 = arith.constant 0 : index
      %184 = vector.load %arg13[%183, %c0_62] : memref<16x32xf32, #tpu.memory_space<vmem>>, vector<1x32xf32>
      %185 = tpu.concatenate %181, %184 in 0 : vector<1x32xf32>, vector<1x32xf32> -> vector<2x32xf32>
      %c0_63 = arith.constant 0 : index
      %c0_64 = arith.constant 0 : index
      %186 = vector.load %arg10[%c0_63, %c0_64] : memref<2x32xf32, #tpu.memory_space<vmem>>, vector<2x32xf32>
      %187 = vector.extract_strided_slice %186 {offsets = [0, 0], sizes = [1, 32], strides = [1, 1]} : vector<2x32xf32> to vector<1x32xf32>
      %188 = vector.extract_strided_slice %186 {offsets = [1, 0], sizes = [1, 32], strides = [1, 1]} : vector<2x32xf32> to vector<1x32xf32>
      %cst_65 = arith.constant dense<0.000000e+00> : vector<2xf32>
      %189 = vector.multi_reduction <add>, %185, %cst_65 [1] : vector<2x32xf32> to vector<2xf32>
      %190 = vector.shape_cast %189 : vector<2xf32> to vector<2x1xf32>
      %cst_66 = arith.constant 3.200000e+01 : f32
      %191 = vector.broadcast %cst_66 : f32 to vector<2x1xf32>
      %192 = arith.divf %190, %191 : vector<2x1xf32>
      %193 = vector.broadcast %192 : vector<2x1xf32> to vector<2x32xf32>
      %194 = arith.subf %185, %193 : vector<2x32xf32>
      %195 = arith.mulf %194, %194 : vector<2x32xf32>
      %cst_67 = arith.constant dense<0.000000e+00> : vector<2xf32>
      %196 = vector.multi_reduction <add>, %195, %cst_67 [1] : vector<2x32xf32> to vector<2xf32>
      %197 = vector.shape_cast %196 : vector<2xf32> to vector<2x1xf32>
      %cst_68 = arith.constant 3.200000e+01 : f32
      %198 = vector.broadcast %cst_68 : f32 to vector<2x1xf32>
      %199 = arith.divf %197, %198 : vector<2x1xf32>
      %200 = vector.broadcast %192 : vector<2x1xf32> to vector<2x32xf32>
      %201 = arith.subf %185, %200 : vector<2x32xf32>
      %cst_69 = arith.constant 9.99999974E-6 : f32
      %202 = vector.broadcast %cst_69 : f32 to vector<2x1xf32>
      %203 = arith.addf %199, %202 : vector<2x1xf32>
      %204 = math.rsqrt %203 : vector<2x1xf32>
      %205 = vector.broadcast %204 : vector<2x1xf32> to vector<2x32xf32>
      %206 = arith.mulf %201, %205 : vector<2x32xf32>
      %207 = vector.broadcast %187 : vector<1x32xf32> to vector<2x32xf32>
      %208 = arith.mulf %206, %207 : vector<2x32xf32>
      %209 = vector.broadcast %188 : vector<1x32xf32> to vector<2x32xf32>
      %210 = arith.addf %208, %209 : vector<2x32xf32>
      %c0_70 = arith.constant 0 : index
      %c0_71 = arith.constant 0 : index
      %211 = vector.load %arg11[%c0_70, %c0_71] : memref<32x32xf32, #tpu.memory_space<vmem>>, vector<32x32xf32>
      %cst_72 = arith.constant dense<0.000000e+00> : vector<2x32xf32>
      %212 = tpu.matmul %210, %211, %cst_72 {dimension_numbers = #tpu.dot_dimension_numbers<[1], [0], [0], [1], [0, 0, 1, 1], [], []>} : vector<2x32xf32>, vector<32x32xf32>, vector<2x32xf32> -> vector<2x32xf32>
      %c0_73 = arith.constant 0 : index
      %c0_74 = arith.constant 0 : index
      %213 = vector.load %arg12[%c0_73, %c0_74] : memref<2x32xf32, #tpu.memory_space<vmem>>, vector<2x32xf32>
      tpu.vector_store %arg12[%c0_73, %c0_74], %212 {strides = array<i32>} : memref<2x32xf32, #tpu.memory_space<vmem>>, vector<2x32xf32>,
    } else {
    }
    return
  }
  func.func @transform_0(%arg0: i32, %arg1: memref<2xi32, #tpu.memory_space<smem>>) -> (i32, i32) {
    %c0_i32 = arith.constant 0 : i32
    %c0_i32_0 = arith.constant 0 : i32
    %c0_i32_1 = arith.constant 0 : i32
    return %c0_i32, %c0_i32_0 : i32, i32
  }
  func.func @transform_1(%arg0: i32, %arg1: memref<2xi32, #tpu.memory_space<smem>>) -> (i32, i32) {
    %c0_i32 = arith.constant 0 : i32
    %c0_i32_0 = arith.constant 0 : i32
    %c0_i32_1 = arith.constant 0 : i32
    return %c0_i32, %c0_i32_0 : i32, i32
  }
  func.func @transform_2(%arg0: i32, %arg1: memref<2xi32, #tpu.memory_space<smem>>) -> (i32, i32, i32) {
    %c0_i32 = arith.constant 0 : i32
    %c0_i32_0 = arith.constant 0 : i32
    %c0_i32_1 = arith.constant 0 : i32
    return %arg0, %c0_i32, %c0_i32_0 : i32, i32, i32
  }
  func.func @transform_3(%arg0: i32, %arg1: memref<2xi32, #tpu.memory_space<smem>>) -> (i32, i32, i32) {
    %c0_i32 = arith.constant 0 : i32
    %c0_i32_0 = arith.constant 0 : i32
    %c0_i32_1 = arith.constant 0 : i32
    return %arg0, %c0_i32, %c0_i32_0 : i32, i32, i32
  }
  func.func @transform_4(%arg0: i32, %arg1: memref<2xi32, #tpu.memory_space<smem>>) -> (i32, i32, i32) {
    %c0_i32 = arith.constant 0 : i32
    %c0_i32_0 = arith.constant 0 : i32
    %c0_i32_1 = arith.constant 0 : i32
    return %arg0, %c0_i32, %c0_i32_0 : i32, i32, i32
  }
  func.func @transform_5(%arg0: i32, %arg1: memref<2xi32, #tpu.memory_space<smem>>) -> (i32, i32, i32) {
    %c0_i32 = arith.constant 0 : i32
    %c0_i32_0 = arith.constant 0 : i32
    %c0_i32_1 = arith.constant 0 : i32
    return %arg0, %c0_i32, %c0_i32_0 : i32, i32, i32
  }
  func.func @transform_6(%arg0: i32, %arg1: memref<2xi32, #tpu.memory_space<smem>>) -> (i32, i32, i32) {
    %c0_i32 = arith.constant 0 : i32
    %c0_i32_0 = arith.constant 0 : i32
    %c0_i32_1 = arith.constant 0 : i32
    return %arg0, %c0_i32, %c0_i32_0 : i32, i32, i32
  }
  func.func @transform_7(%arg0: i32, %arg1: memref<2xi32, #tpu.memory_space<smem>>) -> (i32, i32, i32) {
    %c0_i32 = arith.constant 0 : i32
    %c0_i32_0 = arith.constant 0 : i32
    %c0_i32_1 = arith.constant 0 : i32
    return %arg0, %c0_i32, %c0_i32_0 : i32, i32, i32
  }
  func.func @transform_8(%arg0: i32, %arg1: memref<2xi32, #tpu.memory_space<smem>>) -> (i32, i32) {
    %c0_i32 = arith.constant 0 : i32
    %c0_i32_0 = arith.constant 0 : i32
    %c0_i32_1 = arith.constant 0 : i32
    return %c0_i32, %c0_i32_0 : i32, i32
  }
  func.func @transform_9(%arg0: i32, %arg1: memref<2xi32, #tpu.memory_space<smem>>) -> (i32, i32) {
    %c0_i32 = arith.constant 0 : i32
    %c0_i32_0 = arith.constant 0 : i32
    %c0_i32_1 = arith.constant 0 : i32
    return %c0_i32, %c0_i32_0 : i32, i32
  }
  func.func @transform_10(%arg0: i32, %arg1: memref<2xi32, #tpu.memory_space<smem>>) -> (i32, i32) {
    %c0_i32 = arith.constant 0 : i32
    %c0_i32_0 = arith.constant 0 : i32
    %c0_i32_1 = arith.constant 0 : i32
    return %c0_i32, %c0_i32_0 : i32, i32
  }
}

</mosaic_0001>

<bundles_post_ra>
// kernel: tpu_custom_call.1
= control target key start
LH: loop header
LB: loop body
LE: loop exit
PB: predicated region body
PF: predicated region fallthrough
CT: control target
= control target key end

     0   :  { %s3174_s0 = inlined_call_operand.vmem [shape: s32[2], index: 0, kind: input, shape index: {}]   ;;  %s3175_s1 = inlined_call_operand.vmem [shape: f32[16,32], index: 1, kind: input, shape index: {}]   ;;  %s3176_s2 = inlined_call_operand.vmem [shape: f32[16,16], index: 2, kind: input, shape index: {}]   ;;  %s3177_s3 = inlined_call_operand.vmem [shape: f32[2,9,32], index: 3, kind: input, shape index: {}]   ;;  %s3178_s4 = inlined_call_operand.vmem [shape: f32[2,32,96], index: 4, kind: input, shape index: {}]   ;;  %s3179_s5 = inlined_call_operand.vmem [shape: f32[2,32,32], index: 5, kind: input, shape index: {}]   ;;  %s3180_s6 = inlined_call_operand.vmem [shape: f32[2,32,128], index: 6, kind: input, shape index: {}]   ;;  %s3181_s7 = inlined_call_operand.vmem [shape: f32[2,1,128], index: 7, kind: input, shape index: {}]   ;;  %s3182_s8 = inlined_call_operand.vmem [shape: f32[2,128,32], index: 8, kind: input, shape index: {}]   ;;  %s3183_s9 = inlined_call_operand.vmem [shape: f32[2,32], index: 9, kind: input, shape index: {}]   ;;  %s3184_s10 = inlined_call_operand.vmem [shape: f32[32,32], index: 10, kind: input, shape index: {}]   ;;  %s3185_s11 = inlined_call_operand.hbm [shape: f32[2,32], index: 11, kind: output, shape index: {}]  }
   0x1   :  { %s16_s19 = sshll.u32 %s3174_s0, 4  ;;  %s17_s19 = int_to_ptr.vmem [resolvable:$true] %s16_s19 }
   0x2   :  { %s2736_s20 = scalar_lea.vmem %s17_s19, 16  ;;  %p2741_p1 = scmp.lt.s32.totalorder %s17_s19, %s17_s19 }
   0x3   :  { %p2737_p0 = scmp.ne.s32.totalorder %s17_s19, %s2736_s20  ;;  %p2742_p2 = scmp.lt.s32.totalorder %s2736_s20, %s2736_s20 }
   0x5   :  { %p2743_p3 = por %p2742_p2, %p2741_p1 }
   0x7   :  { %p2744_p4 = pnand %p2743_p3, %p2737_p0 }
   0x9   :  { %2747 = shalt.err (!%p2744_p4)  }
   0xa   :  { %s2788_s21 = smov [#allocation4]  }
   0xb   :  { %19 = dma.vmem_to_smem %s17_s19, 16, %s2788_s21, [#allocation3] }
   0xc   :  { %2778 = dma.done.wait [#allocation3], 16 }
   0xd   :  { %2779 = vsyncadd [#allocation3], 4294967280 }
   0xe   :  { %21 = sfence }
   0xf   :  { %22 = vsyncpa [#allocation6], 0  ;;  %s2868_s22 = smov 0  }
  0x10 LB: > { %s2874_s0 = sadd.s32 4294967295, %s2786_s22   ;;  %p2228_p5 = scmp.ge.s32.totalorder %s2786_s22, 1  ;;  %s2786_s22 = sphi %s2868_s22, %s28_s22  }
  0x11   : > { %p363_p6 = scmp.lt.s32.totalorder %s2786_s22, 3 }
  0x13   : > { %p364_p7 = pnand %p2228_p5, %p363_p6 }
  0x14   : > { %p419_p8 = scmp.lt.s32.totalorder (!%p364_p7), %s2874_s0, 1  ;;  %p2239_p9 = scmp.ne.s32.totalorder (!%p364_p7), %s2874_s0, 0 }
  0x15   : > { %367 = sbr.rel (%p364_p7) target bundleno = 4334 (0x10ee), region = 60 }
  0x1c   : > { %s2880_s23 = scalar_select %p419_p8, %s2874_s0, 1 }
  0x1d   : > { %450 = sbr.rel (%p2239_p9) target bundleno = 36 (0x24), region = 64  ;;  %v451_v0 = vld [vmem:[%s3175_s1] sm:$0xff] (!%p2239_p9)  ;;  %vm453_vm0 = vcmask (!%p2239_p9), 261120   ;;  %v452_v1 = vld [vmem:[%s3175_s1 + $0x8] sm:$0xff] (!%p2239_p9) }
  0x1e   : > { %s2287_s24 = sshll.u32 %s2880_s23, 4  ;;  %s2288_s25 = sshll.u32 %s2880_s23, 5  ;;  %454 = vst.msk [vmem:[#allocation2] sm:$0xff] (!%p2239_p9), %vm453_vm0, %v451_v0  ;;  %455 = vst.msk [vmem:[#allocation2 + $0x8] sm:$0xff] (!%p2239_p9), %vm453_vm0, %v452_v1 }
  0x1f   : > { %s2887_s28 = scalar_lea.vmem %s3177_s3, %s2287_s24  ;;  %s2892_s12 = scalar_lea.vmem %s3178_s4, %s2288_s25 }
  0x20   : > { %s2897_s15 = scalar_lea.vmem %s3179_s5, %s2288_s25  ;;  %s2902_s18 = scalar_lea.vmem %s3180_s6, %s2288_s25 }
  0x21   : > { %s441_s21 = scalar_lea.vmem %s3181_s7, %s2880_s23  ;;  %s2291_s24 = sshll.u32 %s2880_s23, 7 }
  0x22   : > { %s2912_s29 = scalar_lea.vmem %s3182_s8, %s2291_s24 }
  0x24 PF: > { %vm462_vm1 = vcmask 261120   ;;  %v502_v16 = vld [vmem:[%s2892_s12] sm:$0xff]  ;;  %v503_v17 = vld [vmem:[%s2892_s12 + $0x8] sm:$0xff]  ;;  %v504_v18 = vld [vmem:[%s2892_s12 + $0x10] sm:$0xff]  ;;  %v490_v22 = vlaneseq  ;;  %s2789_s16 = smov 32   ;;  %vm623_vm2 = vcmask 64512  }
  0x25   : > { %v2921_v2 = vld [vmem:[#allocation2] sm:$0xff]  ;;  %v2923_v3 = vld [vmem:[#allocation2 + $0x8] sm:$0xff]  ;;  %v2515_v19 = vpack.c.bf16 %v503_v17, %v502_v16  ;;  %v505_v20 = vld [vmem:[%s2892_s12 + $0x18] sm:$0xff]  ;;  %s2790_s12 = smov 96   ;;  %vm709_vm4 = vcmask 130048   ;;  %s2791_s26 = smov 64  }
  0x26   : > { %v463_v4 = vsel %vm462_vm1, %v2921_v2, 0.0  ;;  %v466_v5 = vsel %vm462_vm1, %v2923_v3, 0.0  ;;  %v2519_v21 = vpack.c.bf16 %v505_v20, %v504_v18  ;;  %v2937_v23 = vshrl.u32 %v490_v22, 7  ;;  %v2941_v25 = vld [vmem:[%s2887_s28] sm:$0xff]  ;;  %vm2967_vm3 = vmpackc.low %vm623_vm2, %vm623_vm2  ;;  %v2980_v60 = vld [vmem:[%s3176_s2 + $0x8] sm:$0xff]  ;;  %s2792_s27 = smov 88  }
  0x27   : > { %464 = vadd.xlane.f32.xlu0 %v463_v4  ;;  %2516 = vmatprep.subr.bf16.mxu1 %v2515_v19  ;;  %v2985_v61 = vld [vmem:[%s3176_s2] sm:$0xff]  ;;  %s2793_s30 = smov 120   ;;  %s2794_s13 = smov 56  }
  0x28   : > { %2518 = vmatpush3.bf16.msra.mxu1 %v2515_v19  ;;  %v595_v24 = vsub.s32 3, %v2937_v23  ;;  %v492_v33 = vsub.s32 0, %v2937_v23  ;;  %v498_v34 = vsub.s32 1, %v2937_v23  ;;  %v589_v45 = vsub.s32 2, %v2937_v23  ;;  %s2795_s25 = smov 112   ;;  %s2796_s14 = smov 72  }
  0x29   : > { %2520 = vmatprep.subr.bf16.mxu1 %v2519_v21  ;;  %s2799_s17 = smov 48   ;;  %s2800_s19 = smov 40  }
  0x2a   : > { %v596_v26 = vrot.slane %v2941_v25, %v595_v24  ;;  %v493_v35 = vrot.slane %v2941_v25, %v492_v33  ;;  %v499_v38 = vrot.slane %v2941_v25, %v498_v34  ;;  %v590_v46 = vrot.slane %v2941_v25, %v589_v45  ;;  %p2280_p10 = scmp.ne.s32.totalorder %s2874_s0, 1 }
  0x2b   : > { %467 = vadd.xlane.f32.xlu0 %v466_v5  ;;  %s2006_s23 = sld [smem:[#allocation4]] (!%p2280_p10)  ;;  %vm2015_vm5 = vcmask (!%p2280_p10), 1040384   ;;  %vm2018_vm6 = vcmask (!%p2280_p10), 254976   ;;  %vm2802_vm7 = vmmov (!%p2280_p10), 0  }
  0x2c   : > { %2522 = vmatpush3.bf16.msra.mxu1 %v2519_v21 }
  0x41   : > { %598 = vrot.lane.b32.xlu0 %v596_v26, %s2789_s16  ;;  %s2797_s16 = smov 104  }
  0xb4   : > { %v465_v6 = vpop.xlane.xlu0 %464 }
  0xb5   : > { %v470_v7 = vmul.f32 0.03125, %v465_v6  ;;  %v605_v6 = vsub.s32 4, %v2937_v23 }
  0xb7   : > { %v472_v8 = vsub.f32 %v2921_v2, %v470_v7  ;;  %v606_v7 = vrot.slane %v2941_v25, %v605_v6 }
  0xb8   : > { %v468_v9 = vpop.xlane.xlu0 %467 }
  0xb9   : > { %v471_v10 = vmul.f32 0.03125, %v468_v9  ;;  %v474_v11 = vmul.f32 %v472_v8, %v472_v8 }
  0xbb   : > { %v473_v12 = vsub.f32 %v2923_v3, %v471_v10  ;;  %v476_v13 = vsel %vm462_vm1, %v474_v11, 0.0 }
  0xbc   : > { %477 = vadd.xlane.f32.xlu1 %v476_v13  ;;  %v599_v47 = vpop.permute.xlu0 %598 }
  0xbd   : > { %v475_v14 = vmul.f32 %v473_v12, %v473_v12 }
  0xbf   : > { %v479_v15 = vsel %vm462_vm1, %v475_v14, 0.0 }
  0xc0   : > { %480 = vadd.xlane.f32.xlu1 %v479_v15 }
 0x149   : > { %v478_v27 = vpop.xlane.xlu1 %477 }
 0x14a   : > { %v482_v28 = vmul.f32 0.03125, %v478_v27 }
 0x14c   : > { %v484_v29 = vadd.f32 1e-05, %v482_v28 }
 0x14d   : > { %v481_v30 = vpop.xlane.xlu1 %480 }
 0x14e   : > { %2686 = vrsqrt.f32 %v484_v29  ;;  %v483_v31 = vmul.f32 0.03125, %v481_v30 }
 0x150   : > { %v485_v32 = vadd.f32 1e-05, %v483_v31 }
 0x152   : > { %2688 = vrsqrt.f32 %v485_v32 }
 0x158   : > { %v2687_v36 = vpop.eup %2686 }
 0x159   : > { %v488_v37 = vmul.f32 %v2687_v36, %v472_v8 }
 0x15b   : > { %v494_v39 = vmul.f32 %v493_v35, %v488_v37 }
 0x15c   : > { %v2689_v40 = vpop.eup %2688 }
 0x15d   : > { %v489_v41 = vmul.f32 %v2689_v40, %v473_v12  ;;  %v500_v42 = vadd.f32 %v499_v38, %v494_v39 }
 0x15f   : > { %v495_v43 = vmul.f32 %v493_v35, %v489_v41  ;;  %2379 = vmatprep.mubr.msk.f32.mxu1 %vm462_vm1, %v500_v42 }
 0x161   : > { %v501_v44 = vadd.f32 %v499_v38, %v495_v43 }
 0x163   : > { %2380 = vmatmul.mubr.msk.f32.vlgmr.msra.gmra.mrb[0].mxu1 %vm462_vm1, %v501_v44 }
 0x236   : > { %v2381_v48 = vpop.f32.mrb[0].mxu1 }
 0x237   : > { %v2956_v49 = vadd.f32 %v2381_v48, %v590_v46  ;;  %v602_v50 = vadd.f32 %v2381_v48, %v599_v47  ;;  %v578_v51 = vpop.f32.mrb[1].mxu1 }
 0x238   : > { %v2958_v52 = vadd.f32 %v590_v46, %v578_v51  ;;  %v601_v53 = vadd.f32 %v599_v47, %v578_v51 }
 0x23a   : > { %2386 = vmatprep.mubr.msk.f32.mxu1 %vm623_vm2, %v2958_v52  ;;  %v2962_v54 = vpack.i.bf16 %v602_v50, %v601_v53 }
 0x23c   : > { %2647 = vrot.lane.b32.xlu1 %v2962_v54, %s2790_s12  ;;  %s2798_s12 = smov 80  }
 0x2ae   : > { %v2648_v55 = vpop.permute.xlu1 %2647 }
 0x2af   : > { %v2650_v56 = vunpack.i.h.bf16 %v2648_v55  ;;  %v2649_v57 = vunpack.i.l.bf16 %v2648_v55 }
 0x2b1   : > { %v2523_v59 = vpack.c.bf16 %v2650_v56, %v2649_v57 }
 0x2b3   : > { %2525 = vmatprep.subr.msk.bf16.mxu1 %vm2967_vm3, %v2523_v59 }
 0x2b4   : > { %2528 = vmatpush3.bf16.xpose.msk.msra.mxu1 %vm2967_vm3, %v2523_v59 }
 0x2bb   : > { %2387 = vmatmul.mubr.msk.f32.vlgmr.msra.gmra.mrb[2].mxu1 %vm623_vm2, %v2956_v49 }
 0x38e   : > { %v2388_v62 = vpop.f32.mrb[2].mxu1 }
 0x38f   : > { %v706_v63 = vadd.f32 %v2388_v62, %v2980_v60  ;;  %v700_v0 = vpop.f32.mrb[3].mxu1 }
 0x390   : > { %v701_v1 = vadd.f32 %v700_v0, %v2985_v61 }
 0x391   : > { %v713_v4 = vsel %vm709_vm4, %v706_v63, -inf }
 0x392   : > { %714 = vmax.xlane.f32.xlu0 %v713_v4  ;;  %v710_v5 = vsel %vm709_vm4, %v701_v1, -inf }
 0x393   : > { %711 = vmax.xlane.f32.xlu1 %v710_v5 }
 0x3a8   : > { %608 = vrot.lane.b32.xlu0 %v606_v7, %s2791_s26 }
 0x3ac   : > { %2657 = vrot.lane.b32.xlu0 %v2962_v54, %s2792_s27 }
 0x3b0   : > { %823 = vrot.lane.b32.xlu0 %v2956_v49, %s2793_s30 }
 0x41f   : > { %v715_v8 = vpop.xlane.xlu0 %714 }
 0x420   : > { %v717_v13 = vsub.f32 %v706_v63, %v715_v8  ;;  %v712_v14 = vpop.xlane.xlu1 %711 }
 0x421   : > { %v716_v16 = vsub.f32 %v701_v1, %v712_v14 }
 0x422   : > { %v720_v15 = vmul.f32 1.442695, %v717_v13 }
 0x423   : > { %v609_v9 = vpop.permute.xlu0 %608  ;;  %v718_v17 = vmul.f32 1.442695, %v716_v16 }
 0x424   : > { %v611_v10 = vadd.f32 %v609_v9, %v578_v51  ;;  %v612_v11 = vadd.f32 %v2381_v48, %v609_v9  ;;  %2690 = vpow2.f32 %v720_v15 }
 0x425   : > { %2692 = vpow2.f32 %v718_v17 }
 0x426   : > { %v2995_v12 = vpack.i.bf16 %v612_v11, %v611_v10 }
 0x427   : > { %v2658_v22 = vpop.permute.xlu0 %2657 }
 0x428   : > { %2652 = vrot.lane.b32.xlu1 %v2995_v12, %s2791_s26  ;;  %v2660_v26 = vunpack.i.h.bf16 %v2658_v22  ;;  %v2659_v27 = vunpack.i.l.bf16 %v2658_v22 }
 0x42a   : > { %v2533_v31 = vpack.c.bf16 %v2660_v26, %v2659_v27  ;;  %v614_v26 = vld [vmem:[%s2897_s15 + $0x8] sm:$0xff]  ;;  %v613_v27 = vld [vmem:[%s2897_s15] sm:$0xff] }
 0x42b   : > { %v824_v41 = vpop.permute.xlu0 %823  ;;  %2410 = vmatprep.subr.mxu0 %v614_v26 }
 0x42c   : > { %2411 = vmatpush3.msra.mxu0 %v614_v26  ;;  %v616_v26 = vld [vmem:[%s2897_s15 + $0x18] sm:$0xff] }
 0x42d   : > { %2415 = vmatprep.subr.mxu0 %v613_v27 }
 0x42e   : > { %v2691_v18 = vpop.eup %2690 }
 0x42f   : > { %v725_v19 = vsel %vm709_vm4, %v2691_v18, 0.0  ;;  %v2693_v20 = vpop.eup %2692 }
 0x430   : > { %v722_v21 = vsel %vm709_vm4, %v2693_v20, 0.0 }
 0x44c   : > { %726 = vadd.xlane.f32.xlu1 %v725_v19 }
 0x450   : > { %723 = vadd.xlane.f32.xlu1 %v722_v21 }
 0x461   : > { %821 = vrot.lane.b32.xlu1 %v2958_v52, %s2793_s30 }
 0x49a   : > { %v2653_v24 = vpop.permute.xlu1 %2652 }
 0x49b   : > { %v2655_v28 = vunpack.i.h.bf16 %v2653_v24  ;;  %v2654_v29 = vunpack.i.l.bf16 %v2653_v24 }
 0x49d   : > { %v2529_v30 = vpack.c.bf16 %v2655_v28, %v2654_v29 }
 0x49f   : > { %2530 = vmatprep.subr.bf16.mxu1 %v2529_v30 }
 0x4a0   : > { %2532 = vmatpush3.bf16.msra.mxu1 %v2529_v30 }
 0x4a1   : > { %2535 = vmatprep.subr.msk.bf16.mxu1 %vm2967_vm3, %v2533_v31 }
 0x4d9   : > { %v727_v32 = vpop.xlane.xlu1 %726 }
 0x4da   : > { %2694 = vrcp.f32 %v727_v32 }
 0x4dd   : > { %v724_v35 = vpop.xlane.xlu1 %723 }
 0x4de   : > { %2696 = vrcp.f32 %v724_v35 }
 0x4e1   : > { %v822_v40 = vpop.permute.xlu1 %821 }
 0x4e4   : > { %v2695_v36 = vpop.eup %2694 }
 0x4e5   : > { %v731_v39 = vmul.f32 %v2695_v36, %v2691_v18 }
 0x4e8   : > { %v2697_v37 = vpop.eup %2696 }
 0x4e9   : > { %v730_v38 = vmul.f32 %v2697_v37, %v2693_v20 }
 0x4eb   : > { %2393 = vmatprep.mubr.msk.f32.mxu1 %vm709_vm4, %v730_v38 }
 0x4ec   : > { %2394 = vmatmul.mubr.msk.f32.vlgmr.msra.gmra.mrb[4].mxu1 %vm709_vm4, %v731_v39 }
 0x4ed   : > { %2538 = vmatpush3.bf16.xpose.msk.msra.mxu1 %vm2967_vm3, %v2533_v31  ;;  %2400 = vmatprep.mubr.msk.f32.mxu1 %vm623_vm2, %v822_v40 }
 0x4f4   : > { %2401 = vmatmul.mubr.msk.f32.vlgmr.msra.gmra.mrb[6].mxu1 %vm623_vm2, %v824_v41 }
 0x5bf   : > { %v3009_v42 = vpop.f32.mrb[4].mxu1 }
 0x5c0   : > { %v3011_v43 = vpop.f32.mrb[5].mxu1 }
 0x5c7   : > { %v2402_v44 = vpop.f32.mrb[6].mxu1 }
 0x5c8   : > { %v909_v45 = vadd.f32 %v2402_v44, %v2980_v60  ;;  %v903_v46 = vpop.f32.mrb[7].mxu1 }
 0x5c9   : > { %v904_v47 = vadd.f32 %v903_v46, %v2985_v61 }
 0x5ca   : > { %v915_v48 = vsel %vm709_vm4, %v909_v45, -inf }
 0x5cb   : > { %916 = vmax.xlane.f32.xlu0 %v915_v48  ;;  %v912_v50 = vsel %vm709_vm4, %v904_v47, -inf }
 0x5cc   : > { %913 = vmax.xlane.f32.xlu1 %v912_v50 }
 0x5dd   : > { %2662 = vrot.lane.b32.xlu1 %v2995_v12, %s2794_s13 }
 0x5e1   : > { %1183 = vrot.lane.b32.xlu1 %v2958_v52, %s2795_s25 }
 0x5e5   : > { %1185 = vrot.lane.b32.xlu1 %v2956_v49, %s2795_s25 }
 0x5e9   : > { %2672 = vrot.lane.b32.xlu1 %v2962_v54, %s2796_s14 }
 0x5ed   : > { %1468 = vrot.lane.b32.xlu1 %v2956_v49, %s2797_s16 }
 0x658   : > { %v917_v51 = vpop.xlane.xlu0 %916 }
 0x659   : > { %v919_v53 = vsub.f32 %v909_v45, %v917_v51  ;;  %v914_v55 = vpop.xlane.xlu1 %913 }
 0x65a   : > { %v918_v56 = vsub.f32 %v904_v47, %v914_v55 }
 0x65b   : > { %v922_v57 = vmul.f32 1.442695, %v919_v53 }
 0x65c   : > { %v920_v59 = vmul.f32 1.442695, %v918_v56 }
 0x65d   : > { %2698 = vpow2.f32 %v922_v57  ;;  %v2663_v62 = vpop.permute.xlu1 %2662 }
 0x65e   : > { %v2665_v63 = vunpack.i.h.bf16 %v2663_v62  ;;  %v2664_v0 = vunpack.i.l.bf16 %v2663_v62  ;;  %2700 = vpow2.f32 %v920_v59 }
 0x660   : > { %v2539_v1 = vpack.c.bf16 %v2665_v63, %v2664_v0 }
 0x661   : > { %v1184_v7 = vpop.permute.xlu1 %1183 }
 0x662   : > { %2540 = vmatprep.subr.bf16.mxu1 %v2539_v1 }
 0x663   : > { %2542 = vmatpush3.bf16.msra.mxu1 %v2539_v1 }
 0x665   : > { %v1186_v10 = vpop.permute.xlu1 %1185 }
 0x667   : > { %v2699_v4 = vpop.eup %2698 }
 0x668   : > { %v927_v5 = vsel %vm709_vm4, %v2699_v4, 0.0  ;;  %v2701_v6 = vpop.eup %2700 }
 0x669   : > { %928 = vadd.xlane.f32.xlu0 %v927_v5  ;;  %v924_v49 = vsel %vm709_vm4, %v2701_v6, 0.0  ;;  %v2673_v16 = vpop.permute.xlu1 %2672 }
 0x66a   : > { %v2675_v19 = vunpack.i.h.bf16 %v2673_v16 }
 0x66d   : > { %925 = vadd.xlane.f32.xlu0 %v924_v49  ;;  %v1469_v24 = vpop.permute.xlu1 %1468 }
 0x683   : > { %2667 = vrot.lane.b32.xlu0 %v2962_v54, %s2798_s12  ;;  %v2674_v54 = vunpack.i.l.bf16 %v2673_v16 }
 0x685   : > { %v2553_v21 = vpack.c.bf16 %v2675_v19, %v2674_v54 }
 0x687   : > { %1466 = vrot.lane.b32.xlu0 %v2958_v52, %s2797_s16 }
 0x6f6   : > { %v929_v8 = vpop.xlane.xlu0 %928 }
 0x6f7   : > { %2702 = vrcp.f32 %v929_v8 }
 0x6fa   : > { %v926_v9 = vpop.xlane.xlu0 %925 }
 0x6fb   : > { %2704 = vrcp.f32 %v926_v9 }
 0x6fe   : > { %v2668_v11 = vpop.permute.xlu0 %2667 }
 0x6ff   : > { %v2670_v13 = vunpack.i.h.bf16 %v2668_v11  ;;  %v2669_v14 = vunpack.i.l.bf16 %v2668_v11 }
 0x701   : > { %v2543_v15 = vpack.c.bf16 %v2670_v13, %v2669_v14  ;;  %v2703_v17 = vpop.eup %2702 }
 0x702   : > { %v933_v20 = vmul.f32 %v2703_v17, %v2699_v4  ;;  %v1467_v22 = vpop.permute.xlu0 %1466 }
 0x703   : > { %2545 = vmatprep.subr.msk.bf16.mxu1 %vm2967_vm3, %v2543_v15 }
 0x705   : > { %v2705_v18 = vpop.eup %2704 }
 0x706   : > { %v932_v52 = vmul.f32 %v2705_v18, %v2701_v6 }
 0x708   : > { %2407 = vmatprep.mubr.msk.f32.mxu1 %vm709_vm4, %v932_v52 }
 0x709   : > { %2408 = vmatmul.mubr.msk.f32.vlgmr.msra.gmra.mrb[8].mxu1 %vm709_vm4, %v933_v20 }
 0x70a   : > { %2548 = vmatpush3.bf16.xpose.msk.msra.mxu1 %vm2967_vm3, %v2543_v15  ;;  %2424 = vmatprep.mubr.msk.f32.mxu1 %vm623_vm2, %v1184_v7 }
 0x70b   : > { %2555 = vmatprep.subr.msk.bf16.mxu1 %vm2967_vm3, %v2553_v21 }
 0x711   : > { %2425 = vmatmul.mubr.msk.f32.vlgmr.msra.gmra.mrb[10].mxu1 %vm623_vm2, %v1186_v10  ;;  %v615_v10 = vld [vmem:[%s2897_s15 + $0x10] sm:$0xff] }
 0x712   : > { %2558 = vmatpush3.bf16.xpose.msk.msra.mxu1 %vm2967_vm3, %v2553_v21  ;;  %2443 = vmatprep.mubr.msk.f32.mxu1 %vm623_vm2, %v1467_v22 }
 0x719   : > { %2444 = vmatmul.mubr.msk.f32.vlgmr.msra.gmra.mrb[12].mxu1 %vm623_vm2, %v1469_v24 }
 0x7dc   : > { %v2409_v28 = vpop.f32.mrb[8].mxu1 }
 0x7dd   : > { %v1012_v29 = vpop.f32.mrb[9].mxu1 }
 0x7de   : > { %2412 = vmatprep.mubr.msk.f32.mxu0 %vm623_vm2, %v1012_v29 }
 0x7df   : > { %2413 = vmatmul.mubr.msk.f32.vlgmr.msra.gmra.mrb[0].mxu0 %vm623_vm2, %v2409_v28 }
 0x7e0   : > { %2417 = vmatprep.mubr.msk.f32.mxu0 %vm623_vm2, %v3011_v43  ;;  %2416 = vmatpush3.msra.mxu0 %v613_v27 }
 0x7e4   : > { %v2426_v58 = vpop.f32.mrb[10].mxu1 }
 0x7e5   : > { %v1271_v30 = vadd.f32 %v2426_v58, %v2980_v60  ;;  %v1265_v31 = vpop.f32.mrb[11].mxu1  ;;  %v1753_v58 = vsub.s32 5, %v2937_v23 }
 0x7e6   : > { %v1266_v32 = vadd.f32 %v1265_v31, %v2985_v61 }
 0x7e7   : > { %v1277_v35 = vsel %vm709_vm4, %v1271_v30, -inf  ;;  %2418 = vmatmul.mubr.msk.f32.vlgmr.msra.gmra.mrb[0].mxu0 %vm623_vm2, %v3009_v42 }
 0x7e8   : > { %1278 = vmax.xlane.f32.xlu1 %v1277_v35  ;;  %v1274_v36 = vsel %vm709_vm4, %v1266_v32, -inf }
 0x7e9   : > { %1275 = vmax.xlane.f32.xlu0 %v1274_v36 }
 0x7ec   : > { %v2445_v37 = vpop.f32.mrb[12].mxu1 }
 0x7ed   : > { %v1548_v38 = vpop.f32.mrb[13].mxu1  ;;  %v1554_v40 = vadd.f32 %v2445_v37, %v2980_v60 }
 0x7ee   : > { %v1549_v39 = vadd.f32 %v1548_v38, %v2985_v61 }
 0x7ef   : > { %v1560_v43 = vsel %vm709_vm4, %v1554_v40, -inf }
 0x7f0   : > { %v1557_v41 = vsel %vm709_vm4, %v1549_v39, -inf }
 0x7f1   : > { %1558 = vmax.xlane.f32.xlu1 %v1557_v41 }
 0x7f5   : > { %1561 = vmax.xlane.f32.xlu1 %v1560_v43 }
 0x875   : > { %v1279_v44 = vpop.xlane.xlu1 %1278 }
 0x876   : > { %v1281_v45 = vsub.f32 %v1271_v30, %v1279_v44  ;;  %v1276_v46 = vpop.xlane.xlu0 %1275  ;;  %v1754_v30 = vrot.slane %v2941_v25, %v1753_v58 }
 0x877   : > { %v1280_v42 = vsub.f32 %v1266_v32, %v1276_v46 }
 0x878   : > { %v1284_v47 = vmul.f32 1.442695, %v1281_v45 }
 0x879   : > { %v1282_v48 = vmul.f32 1.442695, %v1280_v42 }
 0x87a   : > { %2706 = vpow2.f32 %v1284_v47 }
 0x87b   : > { %2708 = vpow2.f32 %v1282_v48 }
 0x87e   : > { %v1559_v50 = vpop.xlane.xlu1 %1558 }
 0x87f   : > { %v1563_v51 = vsub.f32 %v1549_v39, %v1559_v50  ;;  %v1795_v50 = vld [vmem:[%s2902_s18] sm:$0xff] }
 0x881   : > { %v1565_v60 = vmul.f32 1.442695, %v1563_v51  ;;  %v1796_v51 = vld [vmem:[%s2902_s18 + $0x8] sm:$0xff] }
 0x882   : > { %v1562_v53 = vpop.xlane.xlu1 %1561 }
 0x883   : > { %v1564_v61 = vsub.f32 %v1554_v40, %v1562_v53  ;;  %v2563_v53 = vpack.c.bf16 %v1796_v51, %v1795_v50 }
 0x884   : > { %v2707_v55 = vpop.eup %2706 }
 0x885   : > { %v1567_v56 = vmul.f32 1.442695, %v1564_v61  ;;  %v1289_v57 = vsel %vm709_vm4, %v2707_v55, 0.0  ;;  %v2709_v59 = vpop.eup %2708  ;;  %2564 = vmatprep.subr.bf16.mxu1 %v2563_v53  ;;  %v1797_v61 = vld [vmem:[%s2902_s18 + $0x10] sm:$0xff] }
 0x886   : > { %1290 = vadd.xlane.f32.xlu0 %v1289_v57  ;;  %v1286_v62 = vsel %vm709_vm4, %v2709_v59, 0.0  ;;  %2566 = vmatpush3.bf16.msra.mxu1 %v2563_v53 }
 0x887   : > { %2710 = vpow2.f32 %v1567_v56 }
 0x888   : > { %2712 = vpow2.f32 %v1565_v60 }
 0x88a   : > { %1287 = vadd.xlane.f32.xlu0 %v1286_v62 }
 0x891   : > { %v2711_v63 = vpop.eup %2710 }
 0x892   : > { %v1572_v0 = vsel %vm709_vm4, %v2711_v63, 0.0  ;;  %v2713_v1 = vpop.eup %2712 }
 0x893   : > { %1573 = vadd.xlane.f32.xlu1 %v1572_v0  ;;  %v1569_v4 = vsel %vm709_vm4, %v2713_v1, 0.0 }
 0x897   : > { %1570 = vadd.xlane.f32.xlu1 %v1569_v4  ;;  %v1791_v4 = vsub.s32 7, %v2937_v23 }
 0x8a0   : > { %2677 = vrot.lane.b32.xlu0 %v2995_v12, %s2799_s17 }
 0x8a8   : > { %2682 = vrot.lane.b32.xlu1 %v2995_v12, %s2800_s19 }
 0x913   : > { %v1291_v5 = vpop.xlane.xlu0 %1290 }
 0x914   : > { %2714 = vrcp.f32 %v1291_v5 }
 0x917   : > { %v1288_v6 = vpop.xlane.xlu0 %1287 }
 0x918   : > { %2716 = vrcp.f32 %v1288_v6 }
 0x91b   : > { %v2678_v49 = vpop.permute.xlu0 %2677 }
 0x91c   : > { %v2680_v7 = vunpack.i.h.bf16 %v2678_v49  ;;  %v2679_v8 = vunpack.i.l.bf16 %v2678_v49 }
 0x91e   : > { %v2549_v9 = vpack.c.bf16 %v2680_v7, %v2679_v8  ;;  %v2715_v13 = vpop.eup %2714  ;;  %v1792_v7 = vrot.slane %v2941_v25, %v1791_v4 }
 0x91f   : > { %v1295_v16 = vmul.f32 %v2715_v13, %v2707_v55  ;;  %v1798_v55 = vld [vmem:[%s2902_s18 + $0x18] sm:$0xff] }
 0x920   : > { %v1574_v11 = vpop.xlane.xlu1 %1573  ;;  %2550 = vmatprep.subr.bf16.mxu0 %v2549_v9  ;;  %v2567_v60 = vpack.c.bf16 %v1798_v55, %v1797_v61 }
 0x921   : > { %2552 = vmatpush3.bf16.msra.mxu0 %v2549_v9 }
 0x922   : > { %v2717_v14 = vpop.eup %2716  ;;  %2434 = vmatprep.subr.mxu0 %v615_v10  ;;  %2568 = vmatprep.subr.bf16.mxu1 %v2567_v60 }
 0x923   : > { %v1294_v15 = vmul.f32 %v2717_v14, %v2709_v59  ;;  %2570 = vmatpush3.bf16.msra.mxu1 %v2567_v60 }
 0x924   : > { %v1571_v17 = vpop.xlane.xlu1 %1570 }
 0x925   : > { %2431 = vmatprep.mubr.msk.f32.mxu0 %vm709_vm4, %v1294_v15  ;;  %2718 = vrcp.f32 %v1571_v17  ;;  %v1903_v15 = vld [vmem:[%s2912_s29] sm:$0xff] }
 0x926   : > { %2432 = vmatmul.mubr.msk.f32.vlgmr.msra.gmra.mrb[2].mxu0 %vm709_vm4, %v1295_v16  ;;  %2720 = vrcp.f32 %v1574_v11  ;;  %v1904_v16 = vld [vmem:[%s2912_s29 + $0x8] sm:$0xff] }
 0x927   : > { %2435 = vmatpush3.msra.mxu0 %v615_v10  ;;  %v2571_v17 = vpack.c.bf16 %v1904_v16, %v1903_v15  ;;  %v2801_v15 = vmov (!%p2280_p10), 0.0|0.0  }
 0x928   : > { %v2683_v12 = vpop.permute.xlu1 %2682 }
 0x929   : > { %v2685_v18 = vunpack.i.h.bf16 %v2683_v12  ;;  %v2684_v19 = vunpack.i.l.bf16 %v2683_v12  ;;  %v1906_v12 = vld [vmem:[%s2912_s29 + $0x18] sm:$0xff] }
 0x92b   : > { %v2559_v54 = vpack.c.bf16 %v2685_v18, %v2684_v19  ;;  %v1907_v19 = vld [vmem:[%s2912_s29 + $0x20] sm:$0xff] }
 0x92d   : > { %2560 = vmatprep.subr.bf16.mxu0 %v2559_v54 }
 0x92f   : > { %v2719_v52 = vpop.eup %2718 }
 0x930   : > { %v2721_v22 = vpop.eup %2720  ;;  %v1577_v24 = vmul.f32 %v2719_v52, %v2713_v1  ;;  %v1785_v1 = vsub.s32 6, %v2937_v23 }
 0x931   : > { %v1578_v27 = vmul.f32 %v2721_v22, %v2711_v63 }
 0x932   : > { %v1786_v5 = vrot.slane %v2941_v25, %v1785_v1  ;;  %v1905_v25 = vld [vmem:[%s2912_s29 + $0x10] sm:$0xff] }
 0x933   : > { %v2575_v18 = vpack.c.bf16 %v1906_v12, %v1905_v25  ;;  %v2803_v25 = vmov (!%p2280_p10), 0.0  }
 0x9f9   : > { %v2433_v20 = vpop.f32.mrb[2].mxu0 }
 0x9fa   : > { %v1374_v21 = vpop.f32.mrb[3].mxu0 }
 0x9fb   : > { %2436 = vmatprep.mubr.msk.f32.mxu0 %vm623_vm2, %v1374_v21  ;;  %v1910_v21 = vld [vmem:[%s2912_s29 + $0x38] sm:$0xff] }
 0x9fc   : > { %2437 = vmatmul.mubr.msk.f32.vlgmr.msra.gmra.mrb[0].mxu0 %vm623_vm2, %v2433_v20  ;;  %v1909_v20 = vld [vmem:[%s2912_s29 + $0x30] sm:$0xff] }
 0x9fd   : > { %2562 = vmatpush3.bf16.msra.mxu0 %v2559_v54  ;;  %2450 = vmatprep.mubr.msk.f32.mxu0 %vm709_vm4, %v1577_v24  ;;  %v1908_v54 = vld [vmem:[%s2912_s29 + $0x28] sm:$0xff]  ;;  %v2583_v22 = vpack.c.bf16 %v1910_v21, %v1909_v20  ;;  %v1911_v24 = vld [vmem:[%s2912_s29 + $0x40] sm:$0xff] }
 0x9fe   : > { %2453 = vmatprep.subr.mxu0 %v616_v26  ;;  %v2579_v52 = vpack.c.bf16 %v1908_v54, %v1907_v19 }
 0xa00   : > { %2451 = vmatmul.mubr.msk.f32.vlgmr.msra.gmra.mrb[4].mxu0 %vm709_vm4, %v1578_v27 }
 0xa01   : > { %2454 = vmatpush3.msra.mxu0 %v616_v26  ;;  %v1912_v26 = vld [vmem:[%s2912_s29 + $0x48] sm:$0xff] }
 0xa02   : > { %2572 = vmatprep.subr.bf16.mxu0 %v2571_v17  ;;  %v2587_v27 = vpack.c.bf16 %v1912_v26, %v1911_v24 }
 0xad3   : > { %v2452_v28 = vpop.f32.mrb[4].mxu0 }
 0xad4   : > { %v1657_v29 = vpop.f32.mrb[5].mxu0 }
 0xad5   : > { %2455 = vmatprep.mubr.msk.f32.mxu0 %vm623_vm2, %v1657_v29  ;;  %v1914_v29 = vld [vmem:[%s2912_s29 + $0x58] sm:$0xff] }
 0xad6   : > { %2456 = vmatmul.mubr.msk.f32.vlgmr.msra.gmra.mrb[0].mxu0 %vm623_vm2, %v2452_v28  ;;  %v1913_v28 = vld [vmem:[%s2912_s29 + $0x50] sm:$0xff] }
 0xad7   : > { %2574 = vmatpush3.bf16.msra.mxu0 %v2571_v17  ;;  %v2591_v58 = vpack.c.bf16 %v1914_v29, %v1913_v28  ;;  %v2045_v17 = vld [vmem:[%s3184_s10 + $0x18] sm:$0xff] (!%p2280_p10) }
 0xad8   : > { %2576 = vmatprep.subr.bf16.mxu0 %v2575_v18 }
 0xadb   : > { %2578 = vmatpush3.bf16.msra.mxu0 %v2575_v18 }
 0xadc   : > { %2580 = vmatprep.subr.bf16.mxu0 %v2579_v52 }
 0xadf   : > { %2582 = vmatpush3.bf16.msra.mxu0 %v2579_v52  ;;  %v2017_v52 = vld [vmem:[%s3183_s9] sm:$0x3] (!%p2280_p10) }
 0xae0   : > { %2584 = vmatprep.subr.bf16.mxu0 %v2583_v22  ;;  %v2035_v20 = vrot.slane (!%p2280_p10), %v2017_v52, %v492_v33  ;;  %v2040_v24 = vrot.slane (!%p2280_p10), %v2017_v52, %v498_v34 }
 0xae3   : > { %2586 = vmatpush3.bf16.msra.mxu0 %v2583_v22 }
 0xae4   : > { %2588 = vmatprep.subr.bf16.mxu0 %v2587_v27 }
 0xae7   : > { %2590 = vmatpush3.bf16.msra.mxu0 %v2587_v27 }
 0xae8   : > { %2592 = vmatprep.subr.bf16.mxu0 %v2591_v58 }
 0xaeb   : > { %2594 = vmatpush3.bf16.msra.mxu0 %v2591_v58 }
 0xba9   : > { %v2457_v31 = vpop.f32.mrb[0].mxu0 }
 0xbaa   : > { %v1750_v32 = vadd.f32 %v2457_v31, %v2923_v3  ;;  %v1738_v35 = vpop.f32.mrb[1].mxu0  ;;  %v1916_v31 = vld [vmem:[%s2912_s29 + $0x68] sm:$0xff] }
 0xbab   : > { %v1749_v36 = vadd.f32 %v1738_v35, %v2921_v2  ;;  %v1917_v35 = vld [vmem:[%s2912_s29 + $0x70] sm:$0xff] }
 0xbac   : > { %v3076_v37 = vadd.f32 %v1754_v30, %v1750_v32 }
 0xbad   : > { %v3078_v38 = vadd.f32 %v1754_v30, %v1749_v36  ;;  %v1915_v30 = vld [vmem:[%s2912_s29 + $0x60] sm:$0xff]  ;;  %v1918_v36 = vld [vmem:[%s2912_s29 + $0x78] sm:$0xff]  ;;  %s2007_s29 = scalar_lea.vmem (!%p2280_p10), [#allocation2], %s2006_s23 }
 0xbae   : > { %v1760_v39 = vsel %vm462_vm1, %v3076_v37, 0.0  ;;  %v2595_v32 = vpack.c.bf16 %v1916_v31, %v1915_v30 }
 0xbaf   : > { %1761 = vadd.xlane.f32.xlu1 %v1760_v39  ;;  %v1757_v40 = vsel %vm462_vm1, %v3078_v38, 0.0  ;;  %v2599_v39 = vpack.c.bf16 %v1918_v36, %v1917_v35 }
 0xbb0   : > { %1758 = vadd.xlane.f32.xlu0 %v1757_v40  ;;  %2596 = vmatprep.subr.bf16.mxu0 %v2595_v32  ;;  %v2274_v40 = vld [vmem:[%s441_s21] ss:$0 sm:$0xff]  ;;  %s2281_s21 = sld [smem:[#allocation4 + $0x1]] (!%p2280_p10) }
 0xbb1   : > { %2598 = vmatpush3.bf16.msra.mxu0 %v2595_v32 }
 0xbb2   : > { %2600 = vmatprep.subr.bf16.mxu0 %v2599_v39 }
 0xbb5   : > { %2602 = vmatpush3.bf16.msra.mxu0 %v2599_v39 }
 0xbb6   : > { %2603 = vmatprep.subr.bf16.mxu0 (!%p2280_p10), %v2801_v15 }
 0xc3c   : > { %v1762_v41 = vpop.xlane.xlu1 %1761 }
 0xc3d   : > { %v1764_v43 = vmul.f32 0.03125, %v1762_v41  ;;  %v1759_v3 = vpop.xlane.xlu0 %1758 }
 0xc3e   : > { %v1763_v2 = vmul.f32 0.03125, %v1759_v3 }
 0xc3f   : > { %v1766_v44 = vsub.f32 %v3076_v37, %v1764_v43 }
 0xc40   : > { %v1765_v45 = vsub.f32 %v3078_v38, %v1763_v2 }
 0xc41   : > { %v1768_v47 = vmul.f32 %v1766_v44, %v1766_v44 }
 0xc42   : > { %v1767_v46 = vmul.f32 %v1765_v45, %v1765_v45 }
 0xc43   : > { %v1772_v48 = vsel %vm462_vm1, %v1768_v47, 0.0 }
 0xc44   : > { %v1769_v42 = vsel %vm462_vm1, %v1767_v46, 0.0 }
 0xc45   : > { %1770 = vadd.xlane.f32.xlu0 %v1769_v42 }
 0xc49   : > { %1773 = vadd.xlane.f32.xlu0 %v1772_v48 }
 0xcd2   : > { %v1771_v56 = vpop.xlane.xlu0 %1770 }
 0xcd3   : > { %v1775_v57 = vmul.f32 0.03125, %v1771_v56  ;;  %v2279_v56 = vld [vmem:[%s2887_s28 + $0x8] ss:$0 sm:$0xff]  ;;  %s2010_s28 = scalar_lea.vmem (!%p2280_p10), [#allocation2], %s2281_s21 }
 0xcd5   : > { %v1777_v59 = vadd.f32 1e-05, %v1775_v57 }
 0xcd6   : > { %v1774_v62 = vpop.xlane.xlu0 %1773 }
 0xcd7   : > { %2722 = vrsqrt.f32 %v1777_v59  ;;  %v1776_v63 = vmul.f32 0.03125, %v1774_v62 }
 0xcd9   : > { %v1778_v0 = vadd.f32 1e-05, %v1776_v63 }
 0xcdb   : > { %2724 = vrsqrt.f32 %v1778_v0 }
 0xce1   : > { %v2723_v6 = vpop.eup %2722 }
 0xce2   : > { %v1781_v49 = vmul.f32 %v2723_v6, %v1765_v45 }
 0xce4   : > { %v1787_v8 = vmul.f32 %v1786_v5, %v1781_v49 }
 0xce5   : > { %v2725_v9 = vpop.eup %2724 }
 0xce6   : > { %v1782_v10 = vmul.f32 %v2725_v9, %v1766_v44  ;;  %v1793_v11 = vadd.f32 %v1792_v7, %v1787_v8 }
 0xce8   : > { %v1788_v13 = vmul.f32 %v1786_v5, %v1782_v10  ;;  %2466 = vmatprep.mubr.msk.f32.mxu1 %vm462_vm1, %v1793_v11  ;;  %v2042_v11 = vld [vmem:[%s3184_s10] sm:$0xff] (!%p2280_p10) }
 0xcea   : > { %v1794_v14 = vadd.f32 %v1792_v7, %v1788_v13  ;;  %v2043_v13 = vld [vmem:[%s3184_s10 + $0x8] sm:$0xff] (!%p2280_p10) }
 0xceb   : > { %v2604_v16 = vpack.c.bf16 (!%p2280_p10), %v2043_v13, %v2042_v11 }
 0xcec   : > { %2467 = vmatmul.mubr.msk.f32.vlgmr.msra.gmra.mrb[14].mxu1 %vm462_vm1, %v1794_v14  ;;  %v2044_v14 = vld [vmem:[%s3184_s10 + $0x10] sm:$0xff] (!%p2280_p10) }
 0xced   : > { %v2607_v12 = vpack.c.bf16 (!%p2280_p10), %v2045_v17, %v2044_v14 }
 0xdbf   : > { %v2468_v41 = vpop.f32.mrb[14].mxu1 }
 0xdc0   : > { %v1884_v43 = vadd.f32 %v2468_v41, %v2274_v40  ;;  %v1878_v3 = vpop.f32.mrb[15].mxu1 }
 0xdc1   : > { %v1879_v2 = vadd.f32 %v2274_v40, %v1878_v3 }
 0xdc2   : > { %v2278_v44 = vmul.f32 -1.702, %v1884_v43 }
 0xdc3   : > { %v2277_v45 = vmul.f32 -1.702, %v1879_v2 }
 0xdc4   : > { %v1893_v46 = vmul.f32 1.442695, %v2278_v44 }
 0xdc5   : > { %v1891_v42 = vmul.f32 1.442695, %v2277_v45 }
 0xdc6   : > { %2726 = vpow2.f32 %v1893_v46 }
 0xdc7   : > { %2728 = vpow2.f32 %v1891_v42 }
 0xdd0   : > { %v2727_v47 = vpop.eup %2726 }
 0xdd1   : > { %v2729_v48 = vpop.eup %2728  ;;  %v1896_v50 = vadd.f32 1.0, %v2727_v47 }
 0xdd2   : > { %v1895_v51 = vadd.f32 1.0, %v2729_v48 }
 0xdd3   : > { %2730 = vrcp.f32 %v1896_v50 }
 0xdd4   : > { %2732 = vrcp.f32 %v1895_v51 }
 0xddd   : > { %v2731_v53 = vpop.eup %2730 }
 0xdde   : > { %v2733_v61 = vpop.eup %2732  ;;  %v1902_v60 = vmul.f32 %v2731_v53, %v1884_v43 }
 0xddf   : > { %v1901_v55 = vmul.f32 %v2733_v61, %v1879_v2 }
 0xde1   : > { %2501 = vmatprep.mubr.f32.mxu0 %v1901_v55 }
 0xde2   : > { %2502 = vmatmul.mubr.f32.vlgmr.msra.gmra.mrb[6].mxu0 %v1902_v60 }
 0xde3   : > { %2512 = vmatprep.mubr.msk.f32.mxu0 (!%p2280_p10), %vm2802_vm7, %v2803_v25  ;;  %2605 = vmatpush3.bf16.msra.mxu0 (!%p2280_p10), %v2604_v16 }
 0xde4   : > { %2606 = vmatprep.subr.bf16.mxu0 (!%p2280_p10), %v2801_v15 }
 0xde7   : > { %2608 = vmatpush3.bf16.msra.mxu0 (!%p2280_p10), %v2607_v12 }
 0xeb5   : > { %v2503_v57 = vpop.f32.mrb[6].mxu0  ;;  %2005 = sbr.rel (%p2280_p10) target bundleno = 4309 (0x10d5), region = 68 }
 0xeb6   : > { %v1995_v59 = vadd.f32 %v2503_v57, %v2279_v56  ;;  %v1989_v62 = vpop.f32.mrb[7].mxu0 }
 0xeb7   : > { %v1990_v63 = vadd.f32 %v2279_v56, %v1989_v62 }
 0xeb8   : > { %v1999_v0 = vadd.f32 %v1995_v59, %v3076_v37 }
 0xeb9   : > { %v1998_v1 = vadd.f32 %v1990_v63, %v3078_v38 }
 0xeba   : > { %2001 = vst.msk [vmem:[#allocation2 + $0x8] sm:$0xff] %vm462_vm1, %v1999_v0 }
 0xebb   : > { %2000 = vst.msk [vmem:[#allocation2] sm:$0xff] %vm462_vm1, %v1998_v1 }
 0xec2   : > { %v2008_v4 = vld [vmem:[%s2007_s29] sm:$0x1] }
 0xec3   : > { %v2011_v5 = vld [vmem:[%s2010_s28] sm:$0x1] }
 0xec4   : > { %v2013_v6 = vrot.slane %v2011_v5, 7 }
 0xec6   : > { %v2016_v49 = vsel %vm2015_vm5, %v2008_v4, %v2013_v6 }
 0xec7   : > { %v2019_v37 = vsel %vm2018_vm6, %v2016_v49, 0.0 }
 0xec8   : > { %2020 = vadd.xlane.f32.xlu0 %v2019_v37 }
 0xf55   : > { %v2021_v38 = vpop.xlane.xlu0 %2020 }
 0xf56   : > { %v2022_v7 = vmul.f32 0.03125, %v2021_v38 }
 0xf58   : > { %v2023_v8 = vsub.f32 %v2016_v49, %v2022_v7 }
 0xf5a   : > { %v2024_v9 = vmul.f32 %v2023_v8, %v2023_v8 }
 0xf5c   : > { %v2025_v10 = vsel %vm2018_vm6, %v2024_v9, 0.0 }
 0xf5d   : > { %2026 = vadd.xlane.f32.xlu0 %v2025_v10 }
 0xfea   : > { %v2027_v18 = vpop.xlane.xlu0 %2026 }
 0xfeb   : > { %v2028_v19 = vmul.f32 0.03125, %v2027_v18 }
 0xfed   : > { %v2029_v54 = vadd.f32 1e-05, %v2028_v19 }
 0xfef   : > { %2734 = vrsqrt.f32 %v2029_v54 }
 0xff9   : > { %v2735_v21 = vpop.eup %2734 }
 0xffa   : > { %v2031_v22 = vmul.f32 %v2735_v21, %v2023_v8 }
 0xffc   : > { %v2036_v26 = vmul.f32 %v2035_v20, %v2031_v22 }
 0xffe   : > { %v2041_v27 = vadd.f32 %v2040_v24, %v2036_v26 }
0x1000   : > { %2513 = vmatmul.mubr.msk.f32.vlgmr.msra.gmra.mrb[0].mxu0 %vm462_vm1, %v2041_v27 }
0x10d3   : > { %v2115_v28 = vpop.f32.mrb[0].mxu0 }
0x10d4   : > { %2119 = vst.msk [vmem:[#allocation5] sm:$0x3] %vm2018_vm6, %v2115_v28  ;;  %v2514_v29 = vpop.f32.mrb[1].mxu0 }
0x10d5 PF: > { %p2619_p11 = scmp.eq.s32.totalorder %s2874_s0, 1  ;;  %s2804_s17 = smov [#allocation5]  }
0x10d6   : > { %s2127_s19 = sshll.u32 %s2804_s17, 4  ;;  %s2128_s19 = int_to_ptr.vmem [resolvable:$true] %s2127_s19 }
0x10d7   : > { %s2748_s15 = scalar_lea.vmem %s2128_s19, 32  ;;  %p2755_p1 = scmp.lt.s32.totalorder %s2128_s19, %s2128_s19 }
0x10d8   : > { %p2749_p12 = scmp.ne.s32.totalorder %s2128_s19, %s2748_s15  ;;  %p2756_p2 = scmp.lt.s32.totalorder %s2748_s15, %s2748_s15 }
0x10da   : > { %p2750_p13 = pnand %p2749_p12, %p2619_p11  ;;  %p2757_p3 = por %p2756_p2, %p2755_p1 }
0x10dc   : > { %p2751_p0 = pneg %p2750_p13 }
0x10de   : > { %p2758_p4 = pnand %p2757_p3, %p2751_p0 }
0x10e0   : > { %2761 = shalt.err (!%p2758_p4)
}
0x10e1   : > { %s2762_s21 = scalar_lea.hbm %s3185_s11, 32 }
0x10e2   : > { %p2763_p5 = scmp.ne.s32.totalorder %s3185_s11, %s2762_s21  ;;  %p2768_p8 = scmp.lt.u32.totalorder %s2762_s21, %s3185_s11 }
0x10e4   : > { %p2764_p6 = pnand %p2763_p5, %p2619_p11 }
0x10e6   : > { %p2765_p7 = pneg %p2764_p6 }
0x10e8   : > { %p2770_p9 = pnand %p2768_p8, %p2765_p7 }
0x10ea   : > { %2773 = shalt.err (!%p2770_p9)
}
0x10eb   : > { %2616 = dma.vmem_to_hbm [thread:$0]  (%p2619_p11), %s2128_s19, 32, %s3185_s11, [#allocation6]  }
0x10ec   : > { %2781 = dma.done.wait (%p2619_p11), [#allocation6], 32  }
0x10ed   : > { %2783 = vsyncadd (%p2619_p11), [#allocation6], 4294967264 }
0x10ee PF: > { %s28_s22 = sadd.s32 1, %s2786_s22  }
0x10ef   : > { %p25_p10 = scmp.ge.s32.totalorder %s28_s22, 4  }
0x10f1   :  { %27 = sbr.rel (!%p25_p10) target bundleno = 16 (0x10), region = 112 }
0x10f8   :  { %2140 = vsyncpa [#allocation6], 1 }
0x10f9   :  { %2142 = vsyncpa [#allocation6 + $0x1], 1 }

</bundles_post_ra>
